<compile_context>
chip_gen: v7x
topology: tpu7x:2x2x1
jax: 0.10.0
libtpu: 0.0.40
codegen_flags: <defaults>
</compile_context>

<pallas_src>
import functools

import jax
import jax.numpy as jnp
from jax.experimental import pallas as pl
from jax.experimental.pallas import tpu as pltpu

EPS = 1e-5


# -----------------------------------------------------------------------------
# Small helpers
# -----------------------------------------------------------------------------
def _spec2(shape):
    """Whole-array 2-D BlockSpec for a grid=(1,) kernel."""
    return pl.BlockSpec(shape, lambda i: (0, 0))


def _tile_rows(v, s):
    """Broadcast a (B, F) per-sample array to (s*B, F), rows ordered (seq, batch)."""
    b, f = v.shape
    return jnp.broadcast_to(v[None], (s, b, f)).reshape(s * b, f)


def _split_rows(w, widths):
    pieces, off = [], 0
    for width in widths:
        pieces.append(w[off:off + width])
        off += width
    return pieces


# -----------------------------------------------------------------------------
# Pallas kernels
# -----------------------------------------------------------------------------
def adain_kernel(x_ref, w_ref, sc_ref, bi_ref, o_ref, *, n_repeat):
    """Weight-shared AdaINLinear applied n_repeat times on a VMEM-resident slab.

    BN is pre-folded: w = W_fc * rsqrt(var+eps) (columns) and
    bi = (-mean*rsqrt(var+eps))*scaler + bias, so one repeat is
        x <- relu((x @ w) * scaler + bi + x)
    """
    x = x_ref[...]
    w = w_ref[...]
    sc = sc_ref[...]
    bi = bi_ref[...]
    for _ in range(n_repeat):
        h = jnp.dot(x, w, preferred_element_type=jnp.float32)
        x = jnp.maximum(h * sc + bi + x, 0.0)
    o_ref[...] = x.astype(o_ref.dtype)


def fused_fc_kernel(*refs, n_pieces, apply_scale, apply_relu):
    """y = [relu]( (sum_k x_k @ w_k) [* scale] + bias ) on whole slabs.

    The x_k / w_k row-splits replace the torch.cat([x, lstm_out]) -> Linear pattern.
    BN is pre-folded into w_k (column scale) and bias.
    """
    xs = refs[:n_pieces]
    ws = refs[n_pieces:2 * n_pieces]
    pos = 2 * n_pieces
    sc_ref = None
    if apply_scale:
        sc_ref = refs[pos]
        pos += 1
    bi_ref = refs[pos]
    o_ref = refs[pos + 1]

    h = jnp.dot(xs[0][...], ws[0][...], preferred_element_type=jnp.float32)
    for x_r, w_r in zip(xs[1:], ws[1:]):
        h = h + jnp.dot(x_r[...], w_r[...], preferred_element_type=jnp.float32)
    if apply_scale:
        h = h * sc_ref[...]
    h = h + bi_ref[...]
    if apply_relu:
        h = jnp.maximum(h, 0.0)
    o_ref[...] = h.astype(o_ref.dtype)


def _lstm_cell(gates, c_prev, hh):
    """PyTorch gate order i, f, g, o."""
    i = jax.nn.sigmoid(gates[:, 0 * hh:1 * hh])
    f = jax.nn.sigmoid(gates[:, 1 * hh:2 * hh])
    g = jnp.tanh(gates[:, 2 * hh:3 * hh])
    o = jax.nn.sigmoid(gates[:, 3 * hh:4 * hh])
    c = f * c_prev + i * g
    h = o * jnp.tanh(c)
    return h, c


def lstm_bidir_kernel(gxf_ref, gxb_ref, whf_ref, whb_ref, of_ref, ob_ref,
                      hf, cf, hb, cb):
    """One time step of a fused bidirectional LSTM layer.

    Input projections (x @ W_ih + b_ih + b_hh) are precomputed outside the sequential
    loop; the backward direction reads/writes through reversed index_maps, so both
    directions advance on the same grid step with their own (h, c) scratch state.
    """
    t = pl.program_id(0)

    @pl.when(t == 0)
    def _():
        hf[...] = jnp.zeros_like(hf)
        cf[...] = jnp.zeros_like(cf)
        hb[...] = jnp.zeros_like(hb)
        cb[...] = jnp.zeros_like(cb)

    hh = hf.shape[-1]
    gates_f = gxf_ref[0] + jnp.dot(hf[...], whf_ref[...],
                                   preferred_element_type=jnp.float32)
    h_f, c_f = _lstm_cell(gates_f, cf[...], hh)
    gates_b = gxb_ref[0] + jnp.dot(hb[...], whb_ref[...],
                                   preferred_element_type=jnp.float32)
    h_b, c_b = _lstm_cell(gates_b, cb[...], hh)
    hf[...] = h_f
    cf[...] = c_f
    hb[...] = h_b
    cb[...] = c_b
    of_ref[0] = h_f.astype(of_ref.dtype)
    ob_ref[0] = h_b.astype(ob_ref.dtype)


def lstm_uni_kernel(gx_ref, whh_ref, o_ref, h_scr, c_scr):
    t = pl.program_id(0)

    @pl.when(t == 0)
    def _():
        h_scr[...] = jnp.zeros_like(h_scr)
        c_scr[...] = jnp.zeros_like(c_scr)

    hh = h_scr.shape[-1]
    gates = gx_ref[0] + jnp.dot(h_scr[...], whh_ref[...],
                                preferred_element_type=jnp.float32)
    h, c = _lstm_cell(gates, c_scr[...], hh)
    h_scr[...] = h
    c_scr[...] = c
    o_ref[0] = h.astype(o_ref.dtype)


# -----------------------------------------------------------------------------
# pallas_call wrappers
# -----------------------------------------------------------------------------
def adain_apply(x_flat, latent, p, n_repeat):
    """Apply the (weight-shared) AdaINLinear block n_repeat times on a flat (S*B, F) slab."""
    n, f = x_flat.shape
    b = latent.shape[0]
    s = n // b
    inv = jax.lax.rsqrt(p["bn_var"] + EPS)            # (1, F)
    w_fold = p["W_fc"] * inv                          # BN fold: scale columns
    bn_shift = -p["bn_mean"] * inv                    # (1, F)
    sc = latent @ p["W_mu"] + p["b_mu"]               # (B, F)  latent_mu_fc (glue)
    bi = latent @ p["W_bi"] + p["b_bi"]               # (B, F)  latent_bias_fc
    bi_eff = bn_shift * sc + bi                       # BN shift folded into the AdaIN bias
    sc_full = _tile_rows(sc, s)
    bi_full = _tile_rows(bi_eff, s)
    return pl.pallas_call(
        functools.partial(adain_kernel, n_repeat=n_repeat),
        out_shape=jax.ShapeDtypeStruct((n, f), jnp.float32),
        grid=(1,),
        in_specs=[_spec2((n, f)), _spec2((f, f)), _spec2((n, f)), _spec2((n, f))],
        out_specs=_spec2((n, f)),
    )(x_flat, w_fold, sc_full, bi_full)


def fc_bn_apply(x_pieces, w, bn_mean, bn_var, scale=None, extra_bias=None, relu=False):
    """(implicit concat of x_pieces) @ w -> BN(eval) [-> *scale + bias -> relu], fused."""
    n = x_pieces[0].shape[0]
    fout = w.shape[1]
    inv = jax.lax.rsqrt(bn_var + EPS)                 # (1, Fout)
    w_fold = w * inv
    bn_shift = -bn_mean * inv                         # (1, Fout)
    w_pieces = _split_rows(w_fold, [p.shape[1] for p in x_pieces])

    inputs = list(x_pieces) + list(w_pieces)
    if scale is not None:
        b = scale.shape[0]
        s = n // b
        bias = bn_shift * scale + extra_bias          # (B, Fout)
        inputs.append(_tile_rows(scale, s))
        inputs.append(_tile_rows(bias, s))
    else:
        inputs.append(jnp.broadcast_to(bn_shift, (n, fout)))

    kernel = functools.partial(fused_fc_kernel, n_pieces=len(x_pieces),
                               apply_scale=scale is not None, apply_relu=relu)
    return pl.pallas_call(
        kernel,
        out_shape=jax.ShapeDtypeStruct((n, fout), jnp.float32),
        grid=(1,),
        in_specs=[_spec2(a.shape) for a in inputs],
        out_specs=_spec2((n, fout)),
    )(*inputs)


def lstm_bidir(gx_f, gx_b, whh_f, whh_b):
    t_len, b, g4 = gx_f.shape
    hh = whh_f.shape[0]
    fwd = lambda t: (t, 0, 0)
    rev = lambda t: (t_len - 1 - t, 0, 0)             # backward dir: no [::-1] materialized
    w_spec = pl.BlockSpec((hh, g4), lambda t: (0, 0))
    return pl.pallas_call(
        lstm_bidir_kernel,
        out_shape=(jax.ShapeDtypeStruct((t_len, b, hh), jnp.float32),
                   jax.ShapeDtypeStruct((t_len, b, hh), jnp.float32)),
        grid=(t_len,),
        in_specs=[pl.BlockSpec((1, b, g4), fwd),
                  pl.BlockSpec((1, b, g4), rev),
                  w_spec, w_spec],
        out_specs=[pl.BlockSpec((1, b, hh), fwd),
                   pl.BlockSpec((1, b, hh), rev)],
        scratch_shapes=[pltpu.VMEM((b, hh), jnp.float32)] * 4,
        compiler_params=pltpu.CompilerParams(dimension_semantics=("arbitrary",)),
    )(gx_f, gx_b, whh_f, whh_b)


def lstm_uni(gx, whh):
    t_len, b, g4 = gx.shape
    hh = whh.shape[0]
    return pl.pallas_call(
        lstm_uni_kernel,
        out_shape=jax.ShapeDtypeStruct((t_len, b, hh), jnp.float32),
        grid=(t_len,),
        in_specs=[pl.BlockSpec((1, b, g4), lambda t: (t, 0, 0)),
                  pl.BlockSpec((hh, g4), lambda t: (0, 0))],
        out_specs=pl.BlockSpec((1, b, hh), lambda t: (t, 0, 0)),
        scratch_shapes=[pltpu.VMEM((b, hh), jnp.float32)] * 2,
        compiler_params=pltpu.CompilerParams(dimension_semantics=("arbitrary",)),
    )(gx, whh)


def _input_gates(pieces, wih, bias):
    """Hoisted LSTM input projection: sum_k pieces[k] @ wih[rows_k] + (b_ih + b_hh)."""
    g = bias                                           # (1, 4H) broadcasts
    off = 0
    for p in pieces:
        width = p.shape[-1]
        g = g + jnp.dot(p, wih[off:off + width])
        off += width
    return g                                           # (seq*B, 4H)


def run_lstm(pieces, seq, batch, layers):
    """Multi-layer (optionally bidirectional) LSTM on flat (seq*B, feat) pieces.

    Returns the layer output as flat pieces (forward[, backward]).  Inter-layer dropout
    is eval-mode identity.
    """
    for dir_params in layers:
        if len(dir_params) == 2:
            (wih_f, whh_f, b_f), (wih_b, whh_b, b_b) = dir_params
            hh = whh_f.shape[0]
            gx_f = _input_gates(pieces, wih_f, b_f).reshape(seq, batch, 4 * hh)
            gx_b = _input_gates(pieces, wih_b, b_b).reshape(seq, batch, 4 * hh)
            out_f, out_b = lstm_bidir(gx_f, gx_b, whh_f, whh_b)
            pieces = (out_f.reshape(seq * batch, hh), out_b.reshape(seq * batch, hh))
        else:
            wih, whh, bias = dir_params[0]
            hh = whh.shape[0]
            gx = _input_gates(pieces, wih, bias).reshape(seq, batch, 4 * hh)
            out = lstm_uni(gx, whh)
            pieces = (out.reshape(seq * batch, hh),)
    return pieces


# -----------------------------------------------------------------------------
# DPRNN_block forward
# -----------------------------------------------------------------------------
def dprnn_block_forward(x, latent, P, adain_layer):
    t_len, b, h = x.shape

    # ---- adain_in (all repeats fused in one kernel) -----------------------------
    x_flat = adain_apply(x.reshape(t_len * b, h), latent, P["adain_in"], adain_layer)

    # ---- bins_lstm + fc2/bn2 + AdaIN affine + ReLU (concat-free) ----------------
    lstm_pieces = run_lstm((x_flat,), t_len, b, P["bins_lstm"])
    sc2 = latent @ P["W_mu2"] + P["b_mu2"]            # (B, H)
    bi2 = latent @ P["W_bi2"] + P["b_bi2"]            # (B, H)
    x_flat = fc_bn_apply((x_flat,) + lstm_pieces, P["W_fc2"],
                         P["bn2_mean"], P["bn2_var"],
                         scale=sc2, extra_bias=bi2, relu=True)

    # ---- permute(2,1,0): (T,B,H) -> (H,B,T); tiny XLA transpose kept for safety --
    x_flat = jnp.transpose(x_flat.reshape(t_len, b, h), (2, 1, 0)).reshape(h * b, t_len)

    # ---- adain_mid (features = nb_frames) ---------------------------------------
    x_flat = adain_apply(x_flat, latent, P["adain_mid"], adain_layer)

    # ---- frames_lstm + fc4/bn4 (concat-free) ------------------------------------
    lstm_pieces = run_lstm((x_flat,), h, b, P["frames_lstm"])
    x_flat = fc_bn_apply((x_flat,) + lstm_pieces, P["W_fc4"],
                         P["bn4_mean"], P["bn4_var"], relu=False)

    # ---- permute(2,1,0): (H,B,T) -> (T,B,H) -------------------------------------
    x_flat = jnp.transpose(x_flat.reshape(h, b, t_len), (2, 1, 0)).reshape(t_len * b, h)

    # ---- adain_out ---------------------------------------------------------------
    x_flat = adain_apply(x_flat, latent, P["adain_out"], adain_layer)
    return x_flat.reshape(t_len, b, h)


# -----------------------------------------------------------------------------
# Deterministic parameter initialization (shapes follow the PyTorch __init__)
# -----------------------------------------------------------------------------
def init_adain_params(key, feat, lat):
    k1, k2, k3, k4, k5 = jax.random.split(key, 5)
    s = 0.1
    return {
        "W_fc": jax.random.normal(k1, (feat, feat), jnp.float32) * s,  # Linear(F,F,bias=False), (in,out)
        "bn_mean": jnp.zeros((1, feat), jnp.float32),
        "bn_var": jnp.ones((1, feat), jnp.float32),
        "W_mu": jax.random.normal(k2, (lat, feat), jnp.float32) * s,   # latent_mu_fc
        "b_mu": jax.random.normal(k3, (feat,), jnp.float32) * s,
        "W_bi": jax.random.normal(k4, (lat, feat), jnp.float32) * s,   # latent_bias_fc
        "b_bi": jax.random.normal(k5, (feat,), jnp.float32) * s,
    }


def init_lstm_params(key, input_size, hidden, num_layers, bidirectional):
    dirs = 2 if bidirectional else 1
    layers = []
    s = 0.1
    for layer in range(num_layers):
        in_sz = input_size if layer == 0 else hidden * dirs
        dir_params = []
        for _ in range(dirs):
            key, k1, k2, k3, k4 = jax.random.split(key, 5)
            wih = jax.random.normal(k1, (in_sz, 4 * hidden), jnp.float32) * s   # (in, 4H)
            whh = jax.random.normal(k2, (hidden, 4 * hidden), jnp.float32) * s  # (H, 4H)
            bias = (jax.random.normal(k3, (1, 4 * hidden), jnp.float32) * s
                    + jax.random.normal(k4, (1, 4 * hidden), jnp.float32) * s)  # b_ih + b_hh
            dir_params.append((wih, whh, bias))
        layers.append(dir_params)
    return layers


def init_dprnn_params(key, hidden_size, latent_size, nb_frames, nb_layers, unidirectional=False):
    h, lat, t_len = hidden_size, latent_size, nb_frames
    keys = jax.random.split(key, 11)
    bins_hidden = h if unidirectional else h // 2
    s = 0.1
    return {
        "adain_in": init_adain_params(keys[0], h, lat),
        "bins_lstm": init_lstm_params(keys[1], h, bins_hidden, nb_layers, not unidirectional),
        "W_fc2": jax.random.normal(keys[2], (2 * h, h), jnp.float32) * s,       # fc2 (bias=False)
        "W_mu2": jax.random.normal(keys[3], (lat, h), jnp.float32) * s,         # latent_mu_fc2
        "b_mu2": jax.random.normal(keys[4], (h,), jnp.float32) * s,
        "W_bi2": jax.random.normal(keys[5], (lat, h), jnp.float32) * s,         # latent_bias_fc2
        "b_bi2": jax.random.normal(keys[6], (h,), jnp.float32) * s,
        "bn2_mean": jnp.zeros((1, h), jnp.float32),
        "bn2_var": jnp.ones((1, h), jnp.float32),
        "adain_mid": init_adain_params(keys[7], t_len, lat),
        "frames_lstm": init_lstm_params(keys[8], t_len, t_len // 2, nb_layers, not unidirectional),
        "W_fc4": jax.random.normal(keys[9], (2 * t_len - 1, t_len), jnp.float32) * s,  # fc4 (bias=False)
        "bn4_mean": jnp.zeros((1, t_len), jnp.float32),
        "bn4_var": jnp.ones((1, t_len), jnp.float32),
        "adain_out": init_adain_params(keys[10], h, lat),
    }


# -----------------------------------------------------------------------------
if __name__ == "__main__":
    # Small, module-consistent sizes: hidden even, nb_frames odd.
    nb_frames = 9      # T  (must be odd: fc4 in_features = 2*T - 1)
    nb_samples = 3     # B
    hidden_size = 32   # H  (must be even)
    latent_size = 8    # L
    adain_layer = 2
    nb_layers = 1

    key = jax.random.PRNGKey(0)
    kx, kl, kp = jax.random.split(key, 3)
    x = jax.random.normal(kx, (nb_frames, nb_samples, hidden_size), jnp.float32)
    latent = jax.random.normal(kl, (nb_samples, latent_size), jnp.float32)
    P = init_dprnn_params(kp, hidden_size, latent_size, nb_frames, nb_layers)

    fwd = jax.jit(functools.partial(dprnn_block_forward, adain_layer=adain_layer))
    out = jax.block_until_ready(fwd(x, latent, P))

    assert out.shape == (nb_frames, nb_samples, hidden_size), out.shape
    assert bool(jnp.all(jnp.isfinite(out)))
    print("KERNEL_OK")
</pallas_src>

<mosaic_0001>
module attributes {stable_mosaic.version = 11 : i64} {
  func.func @adain_kernel(%arg0: i32, %arg1: memref<27x32xf32, #tpu.memory_space<vmem>>, %arg2: memref<32x32xf32, #tpu.memory_space<vmem>>, %arg3: memref<27x32xf32, #tpu.memory_space<vmem>>, %arg4: memref<27x32xf32, #tpu.memory_space<vmem>>, %arg5: memref<27x32xf32, #tpu.memory_space<vmem>>) attributes {dimension_semantics = [#tpu.dimension_semantics<arbitrary>], iteration_bounds = array<i64: 1>, scalar_prefetch = 0 : i64, scratch_operands = 0 : i64, tpu.core_type = #tpu.core_type<tc>, window_params = [{pipeline_mode = #tpu.pipeline_mode<synchronous>, transform_indices = @transform_0, window_bounds = array<i64: 27, 32>}, {pipeline_mode = #tpu.pipeline_mode<synchronous>, transform_indices = @transform_1, window_bounds = array<i64: 32, 32>}, {pipeline_mode = #tpu.pipeline_mode<synchronous>, transform_indices = @transform_2, window_bounds = array<i64: 27, 32>}, {pipeline_mode = #tpu.pipeline_mode<synchronous>, transform_indices = @transform_3, window_bounds = array<i64: 27, 32>}, {pipeline_mode = #tpu.pipeline_mode<synchronous>, transform_indices = @transform_4, window_bounds = array<i64: 27, 32>}]} {
    %c0 = arith.constant 0 : index
    %c0_0 = arith.constant 0 : index
    %0 = vector.load %arg1[%c0, %c0_0] : memref<27x32xf32, #tpu.memory_space<vmem>>, vector<27x32xf32>
    %c0_1 = arith.constant 0 : index
    %c0_2 = arith.constant 0 : index
    %1 = vector.load %arg2[%c0_1, %c0_2] : memref<32x32xf32, #tpu.memory_space<vmem>>, vector<32x32xf32>
    %c0_3 = arith.constant 0 : index
    %c0_4 = arith.constant 0 : index
    %2 = vector.load %arg3[%c0_3, %c0_4] : memref<27x32xf32, #tpu.memory_space<vmem>>, vector<27x32xf32>
    %c0_5 = arith.constant 0 : index
    %c0_6 = arith.constant 0 : index
    %3 = vector.load %arg4[%c0_5, %c0_6] : memref<27x32xf32, #tpu.memory_space<vmem>>, vector<27x32xf32>
    %cst = arith.constant dense<0.000000e+00> : vector<27x32xf32>
    %4 = tpu.matmul %0, %1, %cst {dimension_numbers = #tpu.dot_dimension_numbers<[1], [0], [0], [1], [0, 0, 1, 1], [], []>} : vector<27x32xf32>, vector<32x32xf32>, vector<27x32xf32> -> vector<27x32xf32>
    %5 = arith.mulf %4, %2 : vector<27x32xf32>
    %6 = arith.addf %5, %3 : vector<27x32xf32>
    %7 = arith.addf %6, %0 : vector<27x32xf32>
    %cst_7 = arith.constant 0.000000e+00 : f32
    %8 = vector.broadcast %cst_7 : f32 to vector<27x32xf32>
    %9 = arith.maximumf %7, %8 : vector<27x32xf32>
    %cst_8 = arith.constant dense<0.000000e+00> : vector<27x32xf32>
    %10 = tpu.matmul %9, %1, %cst_8 {dimension_numbers = #tpu.dot_dimension_numbers<[1], [0], [0], [1], [0, 0, 1, 1], [], []>} : vector<27x32xf32>, vector<32x32xf32>, vector<27x32xf32> -> vector<27x32xf32>
    %11 = arith.mulf %10, %2 : vector<27x32xf32>
    %12 = arith.addf %11, %3 : vector<27x32xf32>
    %13 = arith.addf %12, %9 : vector<27x32xf32>
    %cst_9 = arith.constant 0.000000e+00 : f32
    %14 = vector.broadcast %cst_9 : f32 to vector<27x32xf32>
    %15 = arith.maximumf %13, %14 : vector<27x32xf32>
    %c0_10 = arith.constant 0 : index
    %c0_11 = arith.constant 0 : index
    %16 = vector.load %arg5[%c0_10, %c0_11] : memref<27x32xf32, #tpu.memory_space<vmem>>, vector<27x32xf32>
    tpu.vector_store %arg5[%c0_10, %c0_11], %15 {strides = array<i32>} : memref<27x32xf32, #tpu.memory_space<vmem>>, vector<27x32xf32>,
    return
  }
  func.func @transform_0(%arg0: i32) -> (i32, i32) {
    %c0_i32 = arith.constant 0 : i32
    %c0_i32_0 = arith.constant 0 : i32
    %c0_i32_1 = arith.constant 0 : i32
    return %c0_i32, %c0_i32_0 : i32, i32
  }
  func.func @transform_1(%arg0: i32) -> (i32, i32) {
    %c0_i32 = arith.constant 0 : i32
    %c0_i32_0 = arith.constant 0 : i32
    %c0_i32_1 = arith.constant 0 : i32
    return %c0_i32, %c0_i32_0 : i32, i32
  }
  func.func @transform_2(%arg0: i32) -> (i32, i32) {
    %c0_i32 = arith.constant 0 : i32
    %c0_i32_0 = arith.constant 0 : i32
    %c0_i32_1 = arith.constant 0 : i32
    return %c0_i32, %c0_i32_0 : i32, i32
  }
  func.func @transform_3(%arg0: i32) -> (i32, i32) {
    %c0_i32 = arith.constant 0 : i32
    %c0_i32_0 = arith.constant 0 : i32
    %c0_i32_1 = arith.constant 0 : i32
    return %c0_i32, %c0_i32_0 : i32, i32
  }
  func.func @transform_4(%arg0: i32) -> (i32, i32) {
    %c0_i32 = arith.constant 0 : i32
    %c0_i32_0 = arith.constant 0 : i32
    %c0_i32_1 = arith.constant 0 : i32
    return %c0_i32, %c0_i32_0 : i32, i32
  }
}

module attributes {stable_mosaic.version = 11 : i64} {
  func.func @lstm_bidir_kernel(%arg0: i32, %arg1: memref<1x3x64xf32, #tpu.memory_space<vmem>>, %arg2: memref<1x3x64xf32, #tpu.memory_space<vmem>>, %arg3: memref<16x64xf32, #tpu.memory_space<vmem>>, %arg4: memref<16x64xf32, #tpu.memory_space<vmem>>, %arg5: memref<1x3x16xf32, #tpu.memory_space<vmem>>, %arg6: memref<1x3x16xf32, #tpu.memory_space<vmem>>, %arg7: memref<3x16xf32, #tpu.memory_space<vmem>>, %arg8: memref<3x16xf32, #tpu.memory_space<vmem>>, %arg9: memref<3x16xf32, #tpu.memory_space<vmem>>, %arg10: memref<3x16xf32, #tpu.memory_space<vmem>>) attributes {dimension_semantics = [#tpu.dimension_semantics<arbitrary>], iteration_bounds = array<i64: 9>, scalar_prefetch = 0 : i64, scratch_operands = 4 : i64, tpu.core_type = #tpu.core_type<tc>, window_params = [{transform_indices = @transform_0, window_bounds = array<i64: 1, 3, 64>}, {transform_indices = @transform_1, window_bounds = array<i64: 1, 3, 64>}, {pipeline_mode = #tpu.pipeline_mode<synchronous>, transform_indices = @transform_2, window_bounds = array<i64: 16, 64>}, {pipeline_mode = #tpu.pipeline_mode<synchronous>, transform_indices = @transform_3, window_bounds = array<i64: 16, 64>}, {transform_indices = @transform_4, window_bounds = array<i64: 1, 3, 16>}, {transform_indices = @transform_5, window_bounds = array<i64: 1, 3, 16>}]} {
    %c0_i32 = arith.constant 0 : i32
    %0 = arith.cmpi eq, %arg0, %c0_i32 : i32
    %1 = arith.extui %0 : i1 to i32
    %c0_i32_0 = arith.constant 0 : i32
    %2 = arith.cmpi ne, %1, %c0_i32_0 : i32
    scf.if %2 {
      %cst_39 = arith.constant 0.000000e+00 : f32
      %77 = vector.broadcast %cst_39 : f32 to vector<3x16xf32>
      %c0_40 = arith.constant 0 : index
      %c0_41 = arith.constant 0 : index
      %78 = vector.load %arg7[%c0_40, %c0_41] : memref<3x16xf32, #tpu.memory_space<vmem>>, vector<3x16xf32>
      tpu.vector_store %arg7[%c0_40, %c0_41], %77 {strides = array<i32>} : memref<3x16xf32, #tpu.memory_space<vmem>>, vector<3x16xf32>,
      %cst_42 = arith.constant 0.000000e+00 : f32
      %79 = vector.broadcast %cst_42 : f32 to vector<3x16xf32>
      %c0_43 = arith.constant 0 : index
      %c0_44 = arith.constant 0 : index
      %80 = vector.load %arg8[%c0_43, %c0_44] : memref<3x16xf32, #tpu.memory_space<vmem>>, vector<3x16xf32>
      tpu.vector_store %arg8[%c0_43, %c0_44], %79 {strides = array<i32>} : memref<3x16xf32, #tpu.memory_space<vmem>>, vector<3x16xf32>,
      %cst_45 = arith.constant 0.000000e+00 : f32
      %81 = vector.broadcast %cst_45 : f32 to vector<3x16xf32>
      %c0_46 = arith.constant 0 : index
      %c0_47 = arith.constant 0 : index
      %82 = vector.load %arg9[%c0_46, %c0_47] : memref<3x16xf32, #tpu.memory_space<vmem>>, vector<3x16xf32>
      tpu.vector_store %arg9[%c0_46, %c0_47], %81 {strides = array<i32>} : memref<3x16xf32, #tpu.memory_space<vmem>>, vector<3x16xf32>,
      %cst_48 = arith.constant 0.000000e+00 : f32
      %83 = vector.broadcast %cst_48 : f32 to vector<3x16xf32>
      %c0_49 = arith.constant 0 : index
      %c0_50 = arith.constant 0 : index
      %84 = vector.load %arg10[%c0_49, %c0_50] : memref<3x16xf32, #tpu.memory_space<vmem>>, vector<3x16xf32>
      tpu.vector_store %arg10[%c0_49, %c0_50], %83 {strides = array<i32>} : memref<3x16xf32, #tpu.memory_space<vmem>>, vector<3x16xf32>,
    } else {
    }
    %c0 = arith.constant 0 : index
    %c0_1 = arith.constant 0 : index
    %c0_2 = arith.constant 0 : index
    %3 = vector.load %arg1[%c0, %c0_1, %c0_2] : memref<1x3x64xf32, #tpu.memory_space<vmem>>, vector<1x3x64xf32>
    %4 = vector.shape_cast %3 : vector<1x3x64xf32> to vector<3x64xf32>
    %c0_3 = arith.constant 0 : index
    %c0_4 = arith.constant 0 : index
    %5 = vector.load %arg7[%c0_3, %c0_4] : memref<3x16xf32, #tpu.memory_space<vmem>>, vector<3x16xf32>
    %c0_5 = arith.constant 0 : index
    %c0_6 = arith.constant 0 : index
    %6 = vector.load %arg3[%c0_5, %c0_6] : memref<16x64xf32, #tpu.memory_space<vmem>>, vector<16x64xf32>
    %cst = arith.constant dense<0.000000e+00> : vector<3x64xf32>
    %7 = tpu.matmul %5, %6, %cst {dimension_numbers = #tpu.dot_dimension_numbers<[1], [0], [0], [1], [0, 0, 1, 1], [], []>} : vector<3x16xf32>, vector<16x64xf32>, vector<3x64xf32> -> vector<3x64xf32>
    %8 = arith.addf %4, %7 : vector<3x64xf32>
    %c0_7 = arith.constant 0 : index
    %c0_8 = arith.constant 0 : index
    %9 = vector.load %arg8[%c0_7, %c0_8] : memref<3x16xf32, #tpu.memory_space<vmem>>, vector<3x16xf32>
    %10 = vector.extract_strided_slice %8 {offsets = [0, 0], sizes = [3, 16], strides = [1, 1]} : vector<3x64xf32> to vector<3x16xf32>
    %11 = arith.negf %10 : vector<3x16xf32>
    %12 = math.exp %11 : vector<3x16xf32>
    %cst_9 = arith.constant 1.000000e+00 : f32
    %13 = vector.broadcast %cst_9 : f32 to vector<3x16xf32>
    %14 = arith.addf %13, %12 : vector<3x16xf32>
    %15 = arith.divf %13, %14 : vector<3x16xf32>
    %16 = vector.extract_strided_slice %8 {offsets = [0, 16], sizes = [3, 16], strides = [1, 1]} : vector<3x64xf32> to vector<3x16xf32>
    %17 = arith.negf %16 : vector<3x16xf32>
    %18 = math.exp %17 : vector<3x16xf32>
    %cst_10 = arith.constant 1.000000e+00 : f32
    %19 = vector.broadcast %cst_10 : f32 to vector<3x16xf32>
    %20 = arith.addf %19, %18 : vector<3x16xf32>
    %21 = arith.divf %19, %20 : vector<3x16xf32>
    %22 = vector.extract_strided_slice %8 {offsets = [0, 32], sizes = [3, 16], strides = [1, 1]} : vector<3x64xf32> to vector<3x16xf32>
    %23 = math.tanh %22 : vector<3x16xf32>
    %24 = vector.extract_strided_slice %8 {offsets = [0, 48], sizes = [3, 16], strides = [1, 1]} : vector<3x64xf32> to vector<3x16xf32>
    %25 = arith.negf %24 : vector<3x16xf32>
    %26 = math.exp %25 : vector<3x16xf32>
    %cst_11 = arith.constant 1.000000e+00 : f32
    %27 = vector.broadcast %cst_11 : f32 to vector<3x16xf32>
    %28 = arith.addf %27, %26 : vector<3x16xf32>
    %29 = arith.divf %27, %28 : vector<3x16xf32>
    %30 = arith.mulf %21, %9 : vector<3x16xf32>
    %31 = arith.mulf %15, %23 : vector<3x16xf32>
    %32 = arith.addf %30, %31 : vector<3x16xf32>
    %33 = math.tanh %32 : vector<3x16xf32>
    %34 = arith.mulf %29, %33 : vector<3x16xf32>
    %c0_12 = arith.constant 0 : index
    %c0_13 = arith.constant 0 : index
    %c0_14 = arith.constant 0 : index
    %35 = vector.load %arg2[%c0_12, %c0_13, %c0_14] : memref<1x3x64xf32, #tpu.memory_space<vmem>>, vector<1x3x64xf32>
    %36 = vector.shape_cast %35 : vector<1x3x64xf32> to vector<3x64xf32>
    %c0_15 = arith.constant 0 : index
    %c0_16 = arith.constant 0 : index
    %37 = vector.load %arg9[%c0_15, %c0_16] : memref<3x16xf32, #tpu.memory_space<vmem>>, vector<3x16xf32>
    %c0_17 = arith.constant 0 : index
    %c0_18 = arith.constant 0 : index
    %38 = vector.load %arg4[%c0_17, %c0_18] : memref<16x64xf32, #tpu.memory_space<vmem>>, vector<16x64xf32>
    %cst_19 = arith.constant dense<0.000000e+00> : vector<3x64xf32>
    %39 = tpu.matmul %37, %38, %cst_19 {dimension_numbers = #tpu.dot_dimension_numbers<[1], [0], [0], [1], [0, 0, 1, 1], [], []>} : vector<3x16xf32>, vector<16x64xf32>, vector<3x64xf32> -> vector<3x64xf32>
    %40 = arith.addf %36, %39 : vector<3x64xf32>
    %c0_20 = arith.constant 0 : index
    %c0_21 = arith.constant 0 : index
    %41 = vector.load %arg10[%c0_20, %c0_21] : memref<3x16xf32, #tpu.memory_space<vmem>>, vector<3x16xf32>
    %42 = vector.extract_strided_slice %40 {offsets = [0, 0], sizes = [3, 16], strides = [1, 1]} : vector<3x64xf32> to vector<3x16xf32>
    %43 = arith.negf %42 : vector<3x16xf32>
    %44 = math.exp %43 : vector<3x16xf32>
    %cst_22 = arith.constant 1.000000e+00 : f32
    %45 = vector.broadcast %cst_22 : f32 to vector<3x16xf32>
    %46 = arith.addf %45, %44 : vector<3x16xf32>
    %47 = arith.divf %45, %46 : vector<3x16xf32>
    %48 = vector.extract_strided_slice %40 {offsets = [0, 16], sizes = [3, 16], strides = [1, 1]} : vector<3x64xf32> to vector<3x16xf32>
    %49 = arith.negf %48 : vector<3x16xf32>
    %50 = math.exp %49 : vector<3x16xf32>
    %cst_23 = arith.constant 1.000000e+00 : f32
    %51 = vector.broadcast %cst_23 : f32 to vector<3x16xf32>
    %52 = arith.addf %51, %50 : vector<3x16xf32>
    %53 = arith.divf %51, %52 : vector<3x16xf32>
    %54 = vector.extract_strided_slice %40 {offsets = [0, 32], sizes = [3, 16], strides = [1, 1]} : vector<3x64xf32> to vector<3x16xf32>
    %55 = math.tanh %54 : vector<3x16xf32>
    %56 = vector.extract_strided_slice %40 {offsets = [0, 48], sizes = [3, 16], strides = [1, 1]} : vector<3x64xf32> to vector<3x16xf32>
    %57 = arith.negf %56 : vector<3x16xf32>
    %58 = math.exp %57 : vector<3x16xf32>
    %cst_24 = arith.constant 1.000000e+00 : f32
    %59 = vector.broadcast %cst_24 : f32 to vector<3x16xf32>
    %60 = arith.addf %59, %58 : vector<3x16xf32>
    %61 = arith.divf %59, %60 : vector<3x16xf32>
    %62 = arith.mulf %53, %41 : vector<3x16xf32>
    %63 = arith.mulf %47, %55 : vector<3x16xf32>
    %64 = arith.addf %62, %63 : vector<3x16xf32>
    %65 = math.tanh %64 : vector<3x16xf32>
    %66 = arith.mulf %61, %65 : vector<3x16xf32>
    %c0_25 = arith.constant 0 : index
    %c0_26 = arith.constant 0 : index
    %67 = vector.load %arg7[%c0_25, %c0_26] : memref<3x16xf32, #tpu.memory_space<vmem>>, vector<3x16xf32>
    tpu.vector_store %arg7[%c0_25, %c0_26], %34 {strides = array<i32>} : memref<3x16xf32, #tpu.memory_space<vmem>>, vector<3x16xf32>,
    %c0_27 = arith.constant 0 : index
    %c0_28 = arith.constant 0 : index
    %68 = vector.load %arg8[%c0_27, %c0_28] : memref<3x16xf32, #tpu.memory_space<vmem>>, vector<3x16xf32>
    tpu.vector_store %arg8[%c0_27, %c0_28], %32 {strides = array<i32>} : memref<3x16xf32, #tpu.memory_space<vmem>>, vector<3x16xf32>,
    %c0_29 = arith.constant 0 : index
    %c0_30 = arith.constant 0 : index
    %69 = vector.load %arg9[%c0_29, %c0_30] : memref<3x16xf32, #tpu.memory_space<vmem>>, vector<3x16xf32>
    tpu.vector_store %arg9[%c0_29, %c0_30], %66 {strides = array<i32>} : memref<3x16xf32, #tpu.memory_space<vmem>>, vector<3x16xf32>,
    %c0_31 = arith.constant 0 : index
    %c0_32 = arith.constant 0 : index
    %70 = vector.load %arg10[%c0_31, %c0_32] : memref<3x16xf32, #tpu.memory_space<vmem>>, vector<3x16xf32>
    tpu.vector_store %arg10[%c0_31, %c0_32], %64 {strides = array<i32>} : memref<3x16xf32, #tpu.memory_space<vmem>>, vector<3x16xf32>,
    %c0_33 = arith.constant 0 : index
    %c0_34 = arith.constant 0 : index
    %c0_35 = arith.constant 0 : index
    %71 = vector.load %arg5[%c0_33, %c0_34, %c0_35] : memref<1x3x16xf32, #tpu.memory_space<vmem>>, vector<1x3x16xf32>
    %72 = vector.shape_cast %71 : vector<1x3x16xf32> to vector<3x16xf32>
    %73 = vector.shape_cast %34 : vector<3x16xf32> to vector<1x3x16xf32>
    tpu.vector_store %arg5[%c0_33, %c0_34, %c0_35], %73 {strides = array<i32>} : memref<1x3x16xf32, #tpu.memory_space<vmem>>, vector<1x3x16xf32>,
    %c0_36 = arith.constant 0 : index
    %c0_37 = arith.constant 0 : index
    %c0_38 = arith.constant 0 : index
    %74 = vector.load %arg6[%c0_36, %c0_37, %c0_38] : memref<1x3x16xf32, #tpu.memory_space<vmem>>, vector<1x3x16xf32>
    %75 = vector.shape_cast %74 : vector<1x3x16xf32> to vector<3x16xf32>
    %76 = vector.shape_cast %66 : vector<3x16xf32> to vector<1x3x16xf32>
    tpu.vector_store %arg6[%c0_36, %c0_37, %c0_38], %76 {strides = array<i32>} : memref<1x3x16xf32, #tpu.memory_space<vmem>>, vector<1x3x16xf32>,
    return
  }
  func.func @transform_0(%arg0: i32) -> (i32, i32, i32) {
    %c0_i32 = arith.constant 0 : i32
    %c0_i32_0 = arith.constant 0 : i32
    %c0_i32_1 = arith.constant 0 : i32
    return %arg0, %c0_i32, %c0_i32_0 : i32, i32, i32
  }
  func.func @transform_1(%arg0: i32) -> (i32, i32, i32) {
    %c8_i32 = arith.constant 8 : i32
    %0 = arith.subi %c8_i32, %arg0 : i32
    %c0_i32 = arith.constant 0 : i32
    %c0_i32_0 = arith.constant 0 : i32
    %c0_i32_1 = arith.constant 0 : i32
    return %0, %c0_i32, %c0_i32_0 : i32, i32, i32
  }
  func.func @transform_2(%arg0: i32) -> (i32, i32) {
    %c0_i32 = arith.constant 0 : i32
    %c0_i32_0 = arith.constant 0 : i32
    %c0_i32_1 = arith.constant 0 : i32
    return %c0_i32, %c0_i32_0 : i32, i32
  }
  func.func @transform_3(%arg0: i32) -> (i32, i32) {
    %c0_i32 = arith.constant 0 : i32
    %c0_i32_0 = arith.constant 0 : i32
    %c0_i32_1 = arith.constant 0 : i32
    return %c0_i32, %c0_i32_0 : i32, i32
  }
  func.func @transform_4(%arg0: i32) -> (i32, i32, i32) {
    %c0_i32 = arith.constant 0 : i32
    %c0_i32_0 = arith.constant 0 : i32
    %c0_i32_1 = arith.constant 0 : i32
    return %arg0, %c0_i32, %c0_i32_0 : i32, i32, i32
  }
  func.func @transform_5(%arg0: i32) -> (i32, i32, i32) {
    %c8_i32 = arith.constant 8 : i32
    %0 = arith.subi %c8_i32, %arg0 : i32
    %c0_i32 = arith.constant 0 : i32
    %c0_i32_0 = arith.constant 0 : i32
    %c0_i32_1 = arith.constant 0 : i32
    return %0, %c0_i32, %c0_i32_0 : i32, i32, i32
  }
}

module attributes {stable_mosaic.version = 11 : i64} {
  func.func @fused_fc_kernel(%arg0: i32, %arg1: memref<27x32xf32, #tpu.memory_space<vmem>>, %arg2: memref<27x16xf32, #tpu.memory_space<vmem>>, %arg3: memref<27x16xf32, #tpu.memory_space<vmem>>, %arg4: memref<32x32xf32, #tpu.memory_space<vmem>>, %arg5: memref<16x32xf32, #tpu.memory_space<vmem>>, %arg6: memref<16x32xf32, #tpu.memory_space<vmem>>, %arg7: memref<27x32xf32, #tpu.memory_space<vmem>>, %arg8: memref<27x32xf32, #tpu.memory_space<vmem>>, %arg9: memref<27x32xf32, #tpu.memory_space<vmem>>) attributes {dimension_semantics = [#tpu.dimension_semantics<arbitrary>], iteration_bounds = array<i64: 1>, scalar_prefetch = 0 : i64, scratch_operands = 0 : i64, tpu.core_type = #tpu.core_type<tc>, window_params = [{pipeline_mode = #tpu.pipeline_mode<synchronous>, transform_indices = @transform_0, window_bounds = array<i64: 27, 32>}, {pipeline_mode = #tpu.pipeline_mode<synchronous>, transform_indices = @transform_1, window_bounds = array<i64: 27, 16>}, {pipeline_mode = #tpu.pipeline_mode<synchronous>, transform_indices = @transform_2, window_bounds = array<i64: 27, 16>}, {pipeline_mode = #tpu.pipeline_mode<synchronous>, transform_indices = @transform_3, window_bounds = array<i64: 32, 32>}, {pipeline_mode = #tpu.pipeline_mode<synchronous>, transform_indices = @transform_4, window_bounds = array<i64: 16, 32>}, {pipeline_mode = #tpu.pipeline_mode<synchronous>, transform_indices = @transform_5, window_bounds = array<i64: 16, 32>}, {pipeline_mode = #tpu.pipeline_mode<synchronous>, transform_indices = @transform_6, window_bounds = array<i64: 27, 32>}, {pipeline_mode = #tpu.pipeline_mode<synchronous>, transform_indices = @transform_7, window_bounds = array<i64: 27, 32>}, {pipeline_mode = #tpu.pipeline_mode<synchronous>, transform_indices = @transform_8, window_bounds = array<i64: 27, 32>}]} {
    %c0 = arith.constant 0 : index
    %c0_0 = arith.constant 0 : index
    %0 = vector.load %arg1[%c0, %c0_0] : memref<27x32xf32, #tpu.memory_space<vmem>>, vector<27x32xf32>
    %c0_1 = arith.constant 0 : index
    %c0_2 = arith.constant 0 : index
    %1 = vector.load %arg4[%c0_1, %c0_2] : memref<32x32xf32, #tpu.memory_space<vmem>>, vector<32x32xf32>
    %cst = arith.constant dense<0.000000e+00> : vector<27x32xf32>
    %2 = tpu.matmul %0, %1, %cst {dimension_numbers = #tpu.dot_dimension_numbers<[1], [0], [0], [1], [0, 0, 1, 1], [], []>} : vector<27x32xf32>, vector<32x32xf32>, vector<27x32xf32> -> vector<27x32xf32>
    %c0_3 = arith.constant 0 : index
    %c0_4 = arith.constant 0 : index
    %3 = vector.load %arg2[%c0_3, %c0_4] : memref<27x16xf32, #tpu.memory_space<vmem>>, vector<27x16xf32>
    %c0_5 = arith.constant 0 : index
    %c0_6 = arith.constant 0 : index
    %4 = vector.load %arg5[%c0_5, %c0_6] : memref<16x32xf32, #tpu.memory_space<vmem>>, vector<16x32xf32>
    %cst_7 = arith.constant dense<0.000000e+00> : vector<27x32xf32>
    %5 = tpu.matmul %3, %4, %cst_7 {dimension_numbers = #tpu.dot_dimension_numbers<[1], [0], [0], [1], [0, 0, 1, 1], [], []>} : vector<27x16xf32>, vector<16x32xf32>, vector<27x32xf32> -> vector<27x32xf32>
    %6 = arith.addf %2, %5 : vector<27x32xf32>
    %c0_8 = arith.constant 0 : index
    %c0_9 = arith.constant 0 : index
    %7 = vector.load %arg3[%c0_8, %c0_9] : memref<27x16xf32, #tpu.memory_space<vmem>>, vector<27x16xf32>
    %c0_10 = arith.constant 0 : index
    %c0_11 = arith.constant 0 : index
    %8 = vector.load %arg6[%c0_10, %c0_11] : memref<16x32xf32, #tpu.memory_space<vmem>>, vector<16x32xf32>
    %cst_12 = arith.constant dense<0.000000e+00> : vector<27x32xf32>
    %9 = tpu.matmul %7, %8, %cst_12 {dimension_numbers = #tpu.dot_dimension_numbers<[1], [0], [0], [1], [0, 0, 1, 1], [], []>} : vector<27x16xf32>, vector<16x32xf32>, vector<27x32xf32> -> vector<27x32xf32>
    %10 = arith.addf %6, %9 : vector<27x32xf32>
    %c0_13 = arith.constant 0 : index
    %c0_14 = arith.constant 0 : index
    %11 = vector.load %arg7[%c0_13, %c0_14] : memref<27x32xf32, #tpu.memory_space<vmem>>, vector<27x32xf32>
    %12 = arith.mulf %10, %11 : vector<27x32xf32>
    %c0_15 = arith.constant 0 : index
    %c0_16 = arith.constant 0 : index
    %13 = vector.load %arg8[%c0_15, %c0_16] : memref<27x32xf32, #tpu.memory_space<vmem>>, vector<27x32xf32>
    %14 = arith.addf %12, %13 : vector<27x32xf32>
    %cst_17 = arith.constant 0.000000e+00 : f32
    %15 = vector.broadcast %cst_17 : f32 to vector<27x32xf32>
    %16 = arith.maximumf %14, %15 : vector<27x32xf32>
    %c0_18 = arith.constant 0 : index
    %c0_19 = arith.constant 0 : index
    %17 = vector.load %arg9[%c0_18, %c0_19] : memref<27x32xf32, #tpu.memory_space<vmem>>, vector<27x32xf32>
    tpu.vector_store %arg9[%c0_18, %c0_19], %16 {strides = array<i32>} : memref<27x32xf32, #tpu.memory_space<vmem>>, vector<27x32xf32>,
    return
  }
  func.func @transform_0(%arg0: i32) -> (i32, i32) {
    %c0_i32 = arith.constant 0 : i32
    %c0_i32_0 = arith.constant 0 : i32
    %c0_i32_1 = arith.constant 0 : i32
    return %c0_i32, %c0_i32_0 : i32, i32
  }
  func.func @transform_1(%arg0: i32) -> (i32, i32) {
    %c0_i32 = arith.constant 0 : i32
    %c0_i32_0 = arith.constant 0 : i32
    %c0_i32_1 = arith.constant 0 : i32
    return %c0_i32, %c0_i32_0 : i32, i32
  }
  func.func @transform_2(%arg0: i32) -> (i32, i32) {
    %c0_i32 = arith.constant 0 : i32
    %c0_i32_0 = arith.constant 0 : i32
    %c0_i32_1 = arith.constant 0 : i32
    return %c0_i32, %c0_i32_0 : i32, i32
  }
  func.func @transform_3(%arg0: i32) -> (i32, i32) {
    %c0_i32 = arith.constant 0 : i32
    %c0_i32_0 = arith.constant 0 : i32
    %c0_i32_1 = arith.constant 0 : i32
    return %c0_i32, %c0_i32_0 : i32, i32
  }
  func.func @transform_4(%arg0: i32) -> (i32, i32) {
    %c0_i32 = arith.constant 0 : i32
    %c0_i32_0 = arith.constant 0 : i32
    %c0_i32_1 = arith.constant 0 : i32
    return %c0_i32, %c0_i32_0 : i32, i32
  }
  func.func @transform_5(%arg0: i32) -> (i32, i32) {
    %c0_i32 = arith.constant 0 : i32
    %c0_i32_0 = arith.constant 0 : i32
    %c0_i32_1 = arith.constant 0 : i32
    return %c0_i32, %c0_i32_0 : i32, i32
  }
  func.func @transform_6(%arg0: i32) -> (i32, i32) {
    %c0_i32 = arith.constant 0 : i32
    %c0_i32_0 = arith.constant 0 : i32
    %c0_i32_1 = arith.constant 0 : i32
    return %c0_i32, %c0_i32_0 : i32, i32
  }
  func.func @transform_7(%arg0: i32) -> (i32, i32) {
    %c0_i32 = arith.constant 0 : i32
    %c0_i32_0 = arith.constant 0 : i32
    %c0_i32_1 = arith.constant 0 : i32
    return %c0_i32, %c0_i32_0 : i32, i32
  }
  func.func @transform_8(%arg0: i32) -> (i32, i32) {
    %c0_i32 = arith.constant 0 : i32
    %c0_i32_0 = arith.constant 0 : i32
    %c0_i32_1 = arith.constant 0 : i32
    return %c0_i32, %c0_i32_0 : i32, i32
  }
}

module attributes {stable_mosaic.version = 11 : i64} {
  func.func @adain_kernel(%arg0: i32, %arg1: memref<96x9xf32, #tpu.memory_space<vmem>>, %arg2: memref<9x9xf32, #tpu.memory_space<vmem>>, %arg3: memref<96x9xf32, #tpu.memory_space<vmem>>, %arg4: memref<96x9xf32, #tpu.memory_space<vmem>>, %arg5: memref<96x9xf32, #tpu.memory_space<vmem>>) attributes {dimension_semantics = [#tpu.dimension_semantics<arbitrary>], iteration_bounds = array<i64: 1>, scalar_prefetch = 0 : i64, scratch_operands = 0 : i64, tpu.core_type = #tpu.core_type<tc>, window_params = [{pipeline_mode = #tpu.pipeline_mode<synchronous>, transform_indices = @transform_0, window_bounds = array<i64: 96, 9>}, {pipeline_mode = #tpu.pipeline_mode<synchronous>, transform_indices = @transform_1, window_bounds = array<i64: 9, 9>}, {pipeline_mode = #tpu.pipeline_mode<synchronous>, transform_indices = @transform_2, window_bounds = array<i64: 96, 9>}, {pipeline_mode = #tpu.pipeline_mode<synchronous>, transform_indices = @transform_3, window_bounds = array<i64: 96, 9>}, {pipeline_mode = #tpu.pipeline_mode<synchronous>, transform_indices = @transform_4, window_bounds = array<i64: 96, 9>}]} {
    %c0 = arith.constant 0 : index
    %c0_0 = arith.constant 0 : index
    %0 = vector.load %arg1[%c0, %c0_0] : memref<96x9xf32, #tpu.memory_space<vmem>>, vector<96x9xf32>
    %c0_1 = arith.constant 0 : index
    %c0_2 = arith.constant 0 : index
    %1 = vector.load %arg2[%c0_1, %c0_2] : memref<9x9xf32, #tpu.memory_space<vmem>>, vector<9x9xf32>
    %c0_3 = arith.constant 0 : index
    %c0_4 = arith.constant 0 : index
    %2 = vector.load %arg3[%c0_3, %c0_4] : memref<96x9xf32, #tpu.memory_space<vmem>>, vector<96x9xf32>
    %c0_5 = arith.constant 0 : index
    %c0_6 = arith.constant 0 : index
    %3 = vector.load %arg4[%c0_5, %c0_6] : memref<96x9xf32, #tpu.memory_space<vmem>>, vector<96x9xf32>
    %cst = arith.constant dense<0.000000e+00> : vector<96x9xf32>
    %4 = tpu.matmul %0, %1, %cst {dimension_numbers = #tpu.dot_dimension_numbers<[1], [0], [0], [1], [0, 0, 1, 1], [], []>} : vector<96x9xf32>, vector<9x9xf32>, vector<96x9xf32> -> vector<96x9xf32>
    %5 = arith.mulf %4, %2 : vector<96x9xf32>
    %6 = arith.addf %5, %3 : vector<96x9xf32>
    %7 = arith.addf %6, %0 : vector<96x9xf32>
    %cst_7 = arith.constant 0.000000e+00 : f32
    %8 = vector.broadcast %cst_7 : f32 to vector<96x9xf32>
    %9 = arith.maximumf %7, %8 : vector<96x9xf32>
    %cst_8 = arith.constant dense<0.000000e+00> : vector<96x9xf32>
    %10 = tpu.matmul %9, %1, %cst_8 {dimension_numbers = #tpu.dot_dimension_numbers<[1], [0], [0], [1], [0, 0, 1, 1], [], []>} : vector<96x9xf32>, vector<9x9xf32>, vector<96x9xf32> -> vector<96x9xf32>
    %11 = arith.mulf %10, %2 : vector<96x9xf32>
    %12 = arith.addf %11, %3 : vector<96x9xf32>
    %13 = arith.addf %12, %9 : vector<96x9xf32>
    %cst_9 = arith.constant 0.000000e+00 : f32
    %14 = vector.broadcast %cst_9 : f32 to vector<96x9xf32>
    %15 = arith.maximumf %13, %14 : vector<96x9xf32>
    %c0_10 = arith.constant 0 : index
    %c0_11 = arith.constant 0 : index
    %16 = vector.load %arg5[%c0_10, %c0_11] : memref<96x9xf32, #tpu.memory_space<vmem>>, vector<96x9xf32>
    tpu.vector_store %arg5[%c0_10, %c0_11], %15 {strides = array<i32>} : memref<96x9xf32, #tpu.memory_space<vmem>>, vector<96x9xf32>,
    return
  }
  func.func @transform_0(%arg0: i32) -> (i32, i32) {
    %c0_i32 = arith.constant 0 : i32
    %c0_i32_0 = arith.constant 0 : i32
    %c0_i32_1 = arith.constant 0 : i32
    return %c0_i32, %c0_i32_0 : i32, i32
  }
  func.func @transform_1(%arg0: i32) -> (i32, i32) {
    %c0_i32 = arith.constant 0 : i32
    %c0_i32_0 = arith.constant 0 : i32
    %c0_i32_1 = arith.constant 0 : i32
    return %c0_i32, %c0_i32_0 : i32, i32
  }
  func.func @transform_2(%arg0: i32) -> (i32, i32) {
    %c0_i32 = arith.constant 0 : i32
    %c0_i32_0 = arith.constant 0 : i32
    %c0_i32_1 = arith.constant 0 : i32
    return %c0_i32, %c0_i32_0 : i32, i32
  }
  func.func @transform_3(%arg0: i32) -> (i32, i32) {
    %c0_i32 = arith.constant 0 : i32
    %c0_i32_0 = arith.constant 0 : i32
    %c0_i32_1 = arith.constant 0 : i32
    return %c0_i32, %c0_i32_0 : i32, i32
  }
  func.func @transform_4(%arg0: i32) -> (i32, i32) {
    %c0_i32 = arith.constant 0 : i32
    %c0_i32_0 = arith.constant 0 : i32
    %c0_i32_1 = arith.constant 0 : i32
    return %c0_i32, %c0_i32_0 : i32, i32
  }
}

module attributes {stable_mosaic.version = 11 : i64} {
  func.func @fused_fc_kernel(%arg0: i32, %arg1: memref<96x9xf32, #tpu.memory_space<vmem>>, %arg2: memref<96x4xf32, #tpu.memory_space<vmem>>, %arg3: memref<96x4xf32, #tpu.memory_space<vmem>>, %arg4: memref<9x9xf32, #tpu.memory_space<vmem>>, %arg5: memref<4x9xf32, #tpu.memory_space<vmem>>, %arg6: memref<4x9xf32, #tpu.memory_space<vmem>>, %arg7: memref<96x9xf32, #tpu.memory_space<vmem>>, %arg8: memref<96x9xf32, #tpu.memory_space<vmem>>) attributes {dimension_semantics = [#tpu.dimension_semantics<arbitrary>], iteration_bounds = array<i64: 1>, scalar_prefetch = 0 : i64, scratch_operands = 0 : i64, tpu.core_type = #tpu.core_type<tc>, window_params = [{pipeline_mode = #tpu.pipeline_mode<synchronous>, transform_indices = @transform_0, window_bounds = array<i64: 96, 9>}, {pipeline_mode = #tpu.pipeline_mode<synchronous>, transform_indices = @transform_1, window_bounds = array<i64: 96, 4>}, {pipeline_mode = #tpu.pipeline_mode<synchronous>, transform_indices = @transform_2, window_bounds = array<i64: 96, 4>}, {pipeline_mode = #tpu.pipeline_mode<synchronous>, transform_indices = @transform_3, window_bounds = array<i64: 9, 9>}, {pipeline_mode = #tpu.pipeline_mode<synchronous>, transform_indices = @transform_4, window_bounds = array<i64: 4, 9>}, {pipeline_mode = #tpu.pipeline_mode<synchronous>, transform_indices = @transform_5, window_bounds = array<i64: 4, 9>}, {pipeline_mode = #tpu.pipeline_mode<synchronous>, transform_indices = @transform_6, window_bounds = array<i64: 96, 9>}, {pipeline_mode = #tpu.pipeline_mode<synchronous>, transform_indices = @transform_7, window_bounds = array<i64: 96, 9>}]} {
    %c0 = arith.constant 0 : index
    %c0_0 = arith.constant 0 : index
    %0 = vector.load %arg1[%c0, %c0_0] : memref<96x9xf32, #tpu.memory_space<vmem>>, vector<96x9xf32>
    %c0_1 = arith.constant 0 : index
    %c0_2 = arith.constant 0 : index
    %1 = vector.load %arg4[%c0_1, %c0_2] : memref<9x9xf32, #tpu.memory_space<vmem>>, vector<9x9xf32>
    %cst = arith.constant dense<0.000000e+00> : vector<96x9xf32>
    %2 = tpu.matmul %0, %1, %cst {dimension_numbers = #tpu.dot_dimension_numbers<[1], [0], [0], [1], [0, 0, 1, 1], [], []>} : vector<96x9xf32>, vector<9x9xf32>, vector<96x9xf32> -> vector<96x9xf32>
    %c0_3 = arith.constant 0 : index
    %c0_4 = arith.constant 0 : index
    %3 = vector.load %arg2[%c0_3, %c0_4] : memref<96x4xf32, #tpu.memory_space<vmem>>, vector<96x4xf32>
    %c0_5 = arith.constant 0 : index
    %c0_6 = arith.constant 0 : index
    %4 = vector.load %arg5[%c0_5, %c0_6] : memref<4x9xf32, #tpu.memory_space<vmem>>, vector<4x9xf32>
    %cst_7 = arith.constant dense<0.000000e+00> : vector<96x9xf32>
    %5 = tpu.matmul %3, %4, %cst_7 {dimension_numbers = #tpu.dot_dimension_numbers<[1], [0], [0], [1], [0, 0, 1, 1], [], []>} : vector<96x4xf32>, vector<4x9xf32>, vector<96x9xf32> -> vector<96x9xf32>
    %6 = arith.addf %2, %5 : vector<96x9xf32>
    %c0_8 = arith.constant 0 : index
    %c0_9 = arith.constant 0 : index
    %7 = vector.load %arg3[%c0_8, %c0_9] : memref<96x4xf32, #tpu.memory_space<vmem>>, vector<96x4xf32>
    %c0_10 = arith.constant 0 : index
    %c0_11 = arith.constant 0 : index
    %8 = vector.load %arg6[%c0_10, %c0_11] : memref<4x9xf32, #tpu.memory_space<vmem>>, vector<4x9xf32>
    %cst_12 = arith.constant dense<0.000000e+00> : vector<96x9xf32>
    %9 = tpu.matmul %7, %8, %cst_12 {dimension_numbers = #tpu.dot_dimension_numbers<[1], [0], [0], [1], [0, 0, 1, 1], [], []>} : vector<96x4xf32>, vector<4x9xf32>, vector<96x9xf32> -> vector<96x9xf32>
    %10 = arith.addf %6, %9 : vector<96x9xf32>
    %c0_13 = arith.constant 0 : index
    %c0_14 = arith.constant 0 : index
    %11 = vector.load %arg7[%c0_13, %c0_14] : memref<96x9xf32, #tpu.memory_space<vmem>>, vector<96x9xf32>
    %12 = arith.addf %10, %11 : vector<96x9xf32>
    %c0_15 = arith.constant 0 : index
    %c0_16 = arith.constant 0 : index
    %13 = vector.load %arg8[%c0_15, %c0_16] : memref<96x9xf32, #tpu.memory_space<vmem>>, vector<96x9xf32>
    tpu.vector_store %arg8[%c0_15, %c0_16], %12 {strides = array<i32>} : memref<96x9xf32, #tpu.memory_space<vmem>>, vector<96x9xf32>,
    return
  }
  func.func @transform_0(%arg0: i32) -> (i32, i32) {
    %c0_i32 = arith.constant 0 : i32
    %c0_i32_0 = arith.constant 0 : i32
    %c0_i32_1 = arith.constant 0 : i32
    return %c0_i32, %c0_i32_0 : i32, i32
  }
  func.func @transform_1(%arg0: i32) -> (i32, i32) {
    %c0_i32 = arith.constant 0 : i32
    %c0_i32_0 = arith.constant 0 : i32
    %c0_i32_1 = arith.constant 0 : i32
    return %c0_i32, %c0_i32_0 : i32, i32
  }
  func.func @transform_2(%arg0: i32) -> (i32, i32) {
    %c0_i32 = arith.constant 0 : i32
    %c0_i32_0 = arith.constant 0 : i32
    %c0_i32_1 = arith.constant 0 : i32
    return %c0_i32, %c0_i32_0 : i32, i32
  }
  func.func @transform_3(%arg0: i32) -> (i32, i32) {
    %c0_i32 = arith.constant 0 : i32
    %c0_i32_0 = arith.constant 0 : i32
    %c0_i32_1 = arith.constant 0 : i32
    return %c0_i32, %c0_i32_0 : i32, i32
  }
  func.func @transform_4(%arg0: i32) -> (i32, i32) {
    %c0_i32 = arith.constant 0 : i32
    %c0_i32_0 = arith.constant 0 : i32
    %c0_i32_1 = arith.constant 0 : i32
    return %c0_i32, %c0_i32_0 : i32, i32
  }
  func.func @transform_5(%arg0: i32) -> (i32, i32) {
    %c0_i32 = arith.constant 0 : i32
    %c0_i32_0 = arith.constant 0 : i32
    %c0_i32_1 = arith.constant 0 : i32
    return %c0_i32, %c0_i32_0 : i32, i32
  }
  func.func @transform_6(%arg0: i32) -> (i32, i32) {
    %c0_i32 = arith.constant 0 : i32
    %c0_i32_0 = arith.constant 0 : i32
    %c0_i32_1 = arith.constant 0 : i32
    return %c0_i32, %c0_i32_0 : i32, i32
  }
  func.func @transform_7(%arg0: i32) -> (i32, i32) {
    %c0_i32 = arith.constant 0 : i32
    %c0_i32_0 = arith.constant 0 : i32
    %c0_i32_1 = arith.constant 0 : i32
    return %c0_i32, %c0_i32_0 : i32, i32
  }
}

module attributes {stable_mosaic.version = 11 : i64} {
  func.func @lstm_bidir_kernel(%arg0: i32, %arg1: memref<1x3x16xf32, #tpu.memory_space<vmem>>, %arg2: memref<1x3x16xf32, #tpu.memory_space<vmem>>, %arg3: memref<4x16xf32, #tpu.memory_space<vmem>>, %arg4: memref<4x16xf32, #tpu.memory_space<vmem>>, %arg5: memref<1x3x4xf32, #tpu.memory_space<vmem>>, %arg6: memref<1x3x4xf32, #tpu.memory_space<vmem>>, %arg7: memref<3x4xf32, #tpu.memory_space<vmem>>, %arg8: memref<3x4xf32, #tpu.memory_space<vmem>>, %arg9: memref<3x4xf32, #tpu.memory_space<vmem>>, %arg10: memref<3x4xf32, #tpu.memory_space<vmem>>) attributes {dimension_semantics = [#tpu.dimension_semantics<arbitrary>], iteration_bounds = array<i64: 32>, scalar_prefetch = 0 : i64, scratch_operands = 4 : i64, tpu.core_type = #tpu.core_type<tc>, window_params = [{transform_indices = @transform_0, window_bounds = array<i64: 1, 3, 16>}, {transform_indices = @transform_1, window_bounds = array<i64: 1, 3, 16>}, {pipeline_mode = #tpu.pipeline_mode<synchronous>, transform_indices = @transform_2, window_bounds = array<i64: 4, 16>}, {pipeline_mode = #tpu.pipeline_mode<synchronous>, transform_indices = @transform_3, window_bounds = array<i64: 4, 16>}, {transform_indices = @transform_4, window_bounds = array<i64: 1, 3, 4>}, {transform_indices = @transform_5, window_bounds = array<i64: 1, 3, 4>}]} {
    %c0_i32 = arith.constant 0 : i32
    %0 = arith.cmpi eq, %arg0, %c0_i32 : i32
    %1 = arith.extui %0 : i1 to i32
    %c0_i32_0 = arith.constant 0 : i32
    %2 = arith.cmpi ne, %1, %c0_i32_0 : i32
    scf.if %2 {
      %cst_39 = arith.constant 0.000000e+00 : f32
      %77 = vector.broadcast %cst_39 : f32 to vector<3x4xf32>
      %c0_40 = arith.constant 0 : index
      %c0_41 = arith.constant 0 : index
      %78 = vector.load %arg7[%c0_40, %c0_41] : memref<3x4xf32, #tpu.memory_space<vmem>>, vector<3x4xf32>
      tpu.vector_store %arg7[%c0_40, %c0_41], %77 {strides = array<i32>} : memref<3x4xf32, #tpu.memory_space<vmem>>, vector<3x4xf32>,
      %cst_42 = arith.constant 0.000000e+00 : f32
      %79 = vector.broadcast %cst_42 : f32 to vector<3x4xf32>
      %c0_43 = arith.constant 0 : index
      %c0_44 = arith.constant 0 : index
      %80 = vector.load %arg8[%c0_43, %c0_44] : memref<3x4xf32, #tpu.memory_space<vmem>>, vector<3x4xf32>
      tpu.vector_store %arg8[%c0_43, %c0_44], %79 {strides = array<i32>} : memref<3x4xf32, #tpu.memory_space<vmem>>, vector<3x4xf32>,
      %cst_45 = arith.constant 0.000000e+00 : f32
      %81 = vector.broadcast %cst_45 : f32 to vector<3x4xf32>
      %c0_46 = arith.constant 0 : index
      %c0_47 = arith.constant 0 : index
      %82 = vector.load %arg9[%c0_46, %c0_47] : memref<3x4xf32, #tpu.memory_space<vmem>>, vector<3x4xf32>
      tpu.vector_store %arg9[%c0_46, %c0_47], %81 {strides = array<i32>} : memref<3x4xf32, #tpu.memory_space<vmem>>, vector<3x4xf32>,
      %cst_48 = arith.constant 0.000000e+00 : f32
      %83 = vector.broadcast %cst_48 : f32 to vector<3x4xf32>
      %c0_49 = arith.constant 0 : index
      %c0_50 = arith.constant 0 : index
      %84 = vector.load %arg10[%c0_49, %c0_50] : memref<3x4xf32, #tpu.memory_space<vmem>>, vector<3x4xf32>
      tpu.vector_store %arg10[%c0_49, %c0_50], %83 {strides = array<i32>} : memref<3x4xf32, #tpu.memory_space<vmem>>, vector<3x4xf32>,
    } else {
    }
    %c0 = arith.constant 0 : index
    %c0_1 = arith.constant 0 : index
    %c0_2 = arith.constant 0 : index
    %3 = vector.load %arg1[%c0, %c0_1, %c0_2] : memref<1x3x16xf32, #tpu.memory_space<vmem>>, vector<1x3x16xf32>
    %4 = vector.shape_cast %3 : vector<1x3x16xf32> to vector<3x16xf32>
    %c0_3 = arith.constant 0 : index
    %c0_4 = arith.constant 0 : index
    %5 = vector.load %arg7[%c0_3, %c0_4] : memref<3x4xf32, #tpu.memory_space<vmem>>, vector<3x4xf32>
    %c0_5 = arith.constant 0 : index
    %c0_6 = arith.constant 0 : index
    %6 = vector.load %arg3[%c0_5, %c0_6] : memref<4x16xf32, #tpu.memory_space<vmem>>, vector<4x16xf32>
    %cst = arith.constant dense<0.000000e+00> : vector<3x16xf32>
    %7 = tpu.matmul %5, %6, %cst {dimension_numbers = #tpu.dot_dimension_numbers<[1], [0], [0], [1], [0, 0, 1, 1], [], []>} : vector<3x4xf32>, vector<4x16xf32>, vector<3x16xf32> -> vector<3x16xf32>
    %8 = arith.addf %4, %7 : vector<3x16xf32>
    %c0_7 = arith.constant 0 : index
    %c0_8 = arith.constant 0 : index
    %9 = vector.load %arg8[%c0_7, %c0_8] : memref<3x4xf32, #tpu.memory_space<vmem>>, vector<3x4xf32>
    %10 = vector.extract_strided_slice %8 {offsets = [0, 0], sizes = [3, 4], strides = [1, 1]} : vector<3x16xf32> to vector<3x4xf32>
    %11 = arith.negf %10 : vector<3x4xf32>
    %12 = math.exp %11 : vector<3x4xf32>
    %cst_9 = arith.constant 1.000000e+00 : f32
    %13 = vector.broadcast %cst_9 : f32 to vector<3x4xf32>
    %14 = arith.addf %13, %12 : vector<3x4xf32>
    %15 = arith.divf %13, %14 : vector<3x4xf32>
    %16 = vector.extract_strided_slice %8 {offsets = [0, 4], sizes = [3, 4], strides = [1, 1]} : vector<3x16xf32> to vector<3x4xf32>
    %17 = arith.negf %16 : vector<3x4xf32>
    %18 = math.exp %17 : vector<3x4xf32>
    %cst_10 = arith.constant 1.000000e+00 : f32
    %19 = vector.broadcast %cst_10 : f32 to vector<3x4xf32>
    %20 = arith.addf %19, %18 : vector<3x4xf32>
    %21 = arith.divf %19, %20 : vector<3x4xf32>
    %22 = vector.extract_strided_slice %8 {offsets = [0, 8], sizes = [3, 4], strides = [1, 1]} : vector<3x16xf32> to vector<3x4xf32>
    %23 = math.tanh %22 : vector<3x4xf32>
    %24 = vector.extract_strided_slice %8 {offsets = [0, 12], sizes = [3, 4], strides = [1, 1]} : vector<3x16xf32> to vector<3x4xf32>
    %25 = arith.negf %24 : vector<3x4xf32>
    %26 = math.exp %25 : vector<3x4xf32>
    %cst_11 = arith.constant 1.000000e+00 : f32
    %27 = vector.broadcast %cst_11 : f32 to vector<3x4xf32>
    %28 = arith.addf %27, %26 : vector<3x4xf32>
    %29 = arith.divf %27, %28 : vector<3x4xf32>
    %30 = arith.mulf %21, %9 : vector<3x4xf32>
    %31 = arith.mulf %15, %23 : vector<3x4xf32>
    %32 = arith.addf %30, %31 : vector<3x4xf32>
    %33 = math.tanh %32 : vector<3x4xf32>
    %34 = arith.mulf %29, %33 : vector<3x4xf32>
    %c0_12 = arith.constant 0 : index
    %c0_13 = arith.constant 0 : index
    %c0_14 = arith.constant 0 : index
    %35 = vector.load %arg2[%c0_12, %c0_13, %c0_14] : memref<1x3x16xf32, #tpu.memory_space<vmem>>, vector<1x3x16xf32>
    %36 = vector.shape_cast %35 : vector<1x3x16xf32> to vector<3x16xf32>
    %c0_15 = arith.constant 0 : index
    %c0_16 = arith.constant 0 : index
    %37 = vector.load %arg9[%c0_15, %c0_16] : memref<3x4xf32, #tpu.memory_space<vmem>>, vector<3x4xf32>
    %c0_17 = arith.constant 0 : index
    %c0_18 = arith.constant 0 : index
    %38 = vector.load %arg4[%c0_17, %c0_18] : memref<4x16xf32, #tpu.memory_space<vmem>>, vector<4x16xf32>
    %cst_19 = arith.constant dense<0.000000e+00> : vector<3x16xf32>
    %39 = tpu.matmul %37, %38, %cst_19 {dimension_numbers = #tpu.dot_dimension_numbers<[1], [0], [0], [1], [0, 0, 1, 1], [], []>} : vector<3x4xf32>, vector<4x16xf32>, vector<3x16xf32> -> vector<3x16xf32>
    %40 = arith.addf %36, %39 : vector<3x16xf32>
    %c0_20 = arith.constant 0 : index
    %c0_21 = arith.constant 0 : index
    %41 = vector.load %arg10[%c0_20, %c0_21] : memref<3x4xf32, #tpu.memory_space<vmem>>, vector<3x4xf32>
    %42 = vector.extract_strided_slice %40 {offsets = [0, 0], sizes = [3, 4], strides = [1, 1]} : vector<3x16xf32> to vector<3x4xf32>
    %43 = arith.negf %42 : vector<3x4xf32>
    %44 = math.exp %43 : vector<3x4xf32>
    %cst_22 = arith.constant 1.000000e+00 : f32
    %45 = vector.broadcast %cst_22 : f32 to vector<3x4xf32>
    %46 = arith.addf %45, %44 : vector<3x4xf32>
    %47 = arith.divf %45, %46 : vector<3x4xf32>
    %48 = vector.extract_strided_slice %40 {offsets = [0, 4], sizes = [3, 4], strides = [1, 1]} : vector<3x16xf32> to vector<3x4xf32>
    %49 = arith.negf %48 : vector<3x4xf32>
    %50 = math.exp %49 : vector<3x4xf32>
    %cst_23 = arith.constant 1.000000e+00 : f32
    %51 = vector.broadcast %cst_23 : f32 to vector<3x4xf32>
    %52 = arith.addf %51, %50 : vector<3x4xf32>
    %53 = arith.divf %51, %52 : vector<3x4xf32>
    %54 = vector.extract_strided_slice %40 {offsets = [0, 8], sizes = [3, 4], strides = [1, 1]} : vector<3x16xf32> to vector<3x4xf32>
    %55 = math.tanh %54 : vector<3x4xf32>
    %56 = vector.extract_strided_slice %40 {offsets = [0, 12], sizes = [3, 4], strides = [1, 1]} : vector<3x16xf32> to vector<3x4xf32>
    %57 = arith.negf %56 : vector<3x4xf32>
    %58 = math.exp %57 : vector<3x4xf32>
    %cst_24 = arith.constant 1.000000e+00 : f32
    %59 = vector.broadcast %cst_24 : f32 to vector<3x4xf32>
    %60 = arith.addf %59, %58 : vector<3x4xf32>
    %61 = arith.divf %59, %60 : vector<3x4xf32>
    %62 = arith.mulf %53, %41 : vector<3x4xf32>
    %63 = arith.mulf %47, %55 : vector<3x4xf32>
    %64 = arith.addf %62, %63 : vector<3x4xf32>
    %65 = math.tanh %64 : vector<3x4xf32>
    %66 = arith.mulf %61, %65 : vector<3x4xf32>
    %c0_25 = arith.constant 0 : index
    %c0_26 = arith.constant 0 : index
    %67 = vector.load %arg7[%c0_25, %c0_26] : memref<3x4xf32, #tpu.memory_space<vmem>>, vector<3x4xf32>
    tpu.vector_store %arg7[%c0_25, %c0_26], %34 {strides = array<i32>} : memref<3x4xf32, #tpu.memory_space<vmem>>, vector<3x4xf32>,
    %c0_27 = arith.constant 0 : index
    %c0_28 = arith.constant 0 : index
    %68 = vector.load %arg8[%c0_27, %c0_28] : memref<3x4xf32, #tpu.memory_space<vmem>>, vector<3x4xf32>
    tpu.vector_store %arg8[%c0_27, %c0_28], %32 {strides = array<i32>} : memref<3x4xf32, #tpu.memory_space<vmem>>, vector<3x4xf32>,
    %c0_29 = arith.constant 0 : index
    %c0_30 = arith.constant 0 : index
    %69 = vector.load %arg9[%c0_29, %c0_30] : memref<3x4xf32, #tpu.memory_space<vmem>>, vector<3x4xf32>
    tpu.vector_store %arg9[%c0_29, %c0_30], %66 {strides = array<i32>} : memref<3x4xf32, #tpu.memory_space<vmem>>, vector<3x4xf32>,
    %c0_31 = arith.constant 0 : index
    %c0_32 = arith.constant 0 : index
    %70 = vector.load %arg10[%c0_31, %c0_32] : memref<3x4xf32, #tpu.memory_space<vmem>>, vector<3x4xf32>
    tpu.vector_store %arg10[%c0_31, %c0_32], %64 {strides = array<i32>} : memref<3x4xf32, #tpu.memory_space<vmem>>, vector<3x4xf32>,
    %c0_33 = arith.constant 0 : index
    %c0_34 = arith.constant 0 : index
    %c0_35 = arith.constant 0 : index
    %71 = vector.load %arg5[%c0_33, %c0_34, %c0_35] : memref<1x3x4xf32, #tpu.memory_space<vmem>>, vector<1x3x4xf32>
    %72 = vector.shape_cast %71 : vector<1x3x4xf32> to vector<3x4xf32>
    %73 = vector.shape_cast %34 : vector<3x4xf32> to vector<1x3x4xf32>
    tpu.vector_store %arg5[%c0_33, %c0_34, %c0_35], %73 {strides = array<i32>} : memref<1x3x4xf32, #tpu.memory_space<vmem>>, vector<1x3x4xf32>,
    %c0_36 = arith.constant 0 : index
    %c0_37 = arith.constant 0 : index
    %c0_38 = arith.constant 0 : index
    %74 = vector.load %arg6[%c0_36, %c0_37, %c0_38] : memref<1x3x4xf32, #tpu.memory_space<vmem>>, vector<1x3x4xf32>
    %75 = vector.shape_cast %74 : vector<1x3x4xf32> to vector<3x4xf32>
    %76 = vector.shape_cast %66 : vector<3x4xf32> to vector<1x3x4xf32>
    tpu.vector_store %arg6[%c0_36, %c0_37, %c0_38], %76 {strides = array<i32>} : memref<1x3x4xf32, #tpu.memory_space<vmem>>, vector<1x3x4xf32>,
    return
  }
  func.func @transform_0(%arg0: i32) -> (i32, i32, i32) {
    %c0_i32 = arith.constant 0 : i32
    %c0_i32_0 = arith.constant 0 : i32
    %c0_i32_1 = arith.constant 0 : i32
    return %arg0, %c0_i32, %c0_i32_0 : i32, i32, i32
  }
  func.func @transform_1(%arg0: i32) -> (i32, i32, i32) {
    %c31_i32 = arith.constant 31 : i32
    %0 = arith.subi %c31_i32, %arg0 : i32
    %c0_i32 = arith.constant 0 : i32
    %c0_i32_0 = arith.constant 0 : i32
    %c0_i32_1 = arith.constant 0 : i32
    return %0, %c0_i32, %c0_i32_0 : i32, i32, i32
  }
  func.func @transform_2(%arg0: i32) -> (i32, i32) {
    %c0_i32 = arith.constant 0 : i32
    %c0_i32_0 = arith.constant 0 : i32
    %c0_i32_1 = arith.constant 0 : i32
    return %c0_i32, %c0_i32_0 : i32, i32
  }
  func.func @transform_3(%arg0: i32) -> (i32, i32) {
    %c0_i32 = arith.constant 0 : i32
    %c0_i32_0 = arith.constant 0 : i32
    %c0_i32_1 = arith.constant 0 : i32
    return %c0_i32, %c0_i32_0 : i32, i32
  }
  func.func @transform_4(%arg0: i32) -> (i32, i32, i32) {
    %c0_i32 = arith.constant 0 : i32
    %c0_i32_0 = arith.constant 0 : i32
    %c0_i32_1 = arith.constant 0 : i32
    return %arg0, %c0_i32, %c0_i32_0 : i32, i32, i32
  }
  func.func @transform_5(%arg0: i32) -> (i32, i32, i32) {
    %c31_i32 = arith.constant 31 : i32
    %0 = arith.subi %c31_i32, %arg0 : i32
    %c0_i32 = arith.constant 0 : i32
    %c0_i32_0 = arith.constant 0 : i32
    %c0_i32_1 = arith.constant 0 : i32
    return %0, %c0_i32, %c0_i32_0 : i32, i32, i32
  }
}

</mosaic_0001>

<bundles_post_ra>
// kernel: dprnn_block_forward.7
= control target key start
LH: loop header
LB: loop body
LE: loop exit
PB: predicated region body
PF: predicated region fallthrough
CT: control target
= control target key end

     0   :  { %vm33_vm0 = vcmask 261120   ;;  %vm263_vm1 = vcmask 256000   ;;  %s433_s1 = inlined_call_operand.vmem [shape: f32[32,32], index: 1, kind: input, shape index: {}]   ;;  %s434_s0 = inlined_call_operand.vmem [shape: f32[27,32], index: 0, kind: input, shape index: {}]   ;;  %s435_s2 = inlined_call_operand.vmem [shape: f32[27,32], index: 2, kind: input, shape index: {}]   ;;  %s436_s3 = inlined_call_operand.vmem [shape: f32[27,32], index: 3, kind: input, shape index: {}]   ;;  %s437_s4 = inlined_call_operand.vmem [shape: f32[27,32], index: 4, kind: output, shape index: {}]  }
   0x1   :  { %v21_v0 = vld [vmem:[%s433_s1] sm:$0xff]  ;;  %v22_v1 = vld [vmem:[%s433_s1 + $0x8] sm:$0xff]  ;;  %v23_v2 = vld [vmem:[%s433_s1 + $0x10] sm:$0xff] }
   0x2   :  { %v321_v3 = vpack.c.bf16 %v22_v1, %v21_v0  ;;  %v24_v4 = vld [vmem:[%s433_s1 + $0x18] sm:$0xff]  ;;  %v17_v5 = vld [vmem:[%s434_s0] sm:$0xff]  ;;  %v18_v7 = vld [vmem:[%s434_s0 + $0x8] sm:$0xff] }
   0x3   :  { %v325_v6 = vpack.c.bf16 %v24_v4, %v23_v2  ;;  %301 = vmatprep.mubr.msk.f32.mxu0 %vm33_vm0, %v17_v5  ;;  %v19_v8 = vld [vmem:[%s434_s0 + $0x10] sm:$0xff]  ;;  %v20_v9 = vld [vmem:[%s434_s0 + $0x18] sm:$0x7]  ;;  %v26_v10 = vld [vmem:[%s435_s2 + $0x8] sm:$0xff] }
   0x4   :  { %322 = vmatprep.subr.bf16.mxu0 %v321_v3  ;;  %330 = vmatprep.subr.bf16.mxu1 %v321_v3  ;;  %v25_v11 = vld [vmem:[%s435_s2] sm:$0xff]  ;;  %v30_v12 = vld [vmem:[%s436_s3 + $0x8] sm:$0xff]  ;;  %v28_v18 = vld [vmem:[%s435_s2 + $0x18] sm:$0x7] }
   0x5   :  { %324 = vmatpush3.bf16.msra.mxu0 %v321_v3  ;;  %332 = vmatpush3.bf16.msra.mxu1 %v321_v3  ;;  %v29_v15 = vld [vmem:[%s436_s3] sm:$0xff]  ;;  %v27_v20 = vld [vmem:[%s435_s2 + $0x10] sm:$0xff]  ;;  %v32_v22 = vld [vmem:[%s436_s3 + $0x18] sm:$0x7] }
   0x6   :  { %326 = vmatprep.subr.bf16.mxu0 %v325_v6  ;;  %334 = vmatprep.subr.bf16.mxu1 %v325_v6  ;;  %v31_v26 = vld [vmem:[%s436_s3 + $0x10] sm:$0xff] }
   0x9   :  { %328 = vmatpush3.bf16.msra.mxu0 %v325_v6  ;;  %336 = vmatpush3.bf16.msra.mxu1 %v325_v6 }
   0xc   :  { %302 = vmatmul.mubr.msk.f32.vlgmr.msra.gmra.mrb[0].mxu0 %vm33_vm0, %v18_v7 }
   0xd   :  { %304 = vmatprep.mubr.msk.f32.mxu0 %vm33_vm0, %v19_v8 }
  0x10   :  { %305 = vmatmul.mubr.msk.f32.gmra.mrb[2].mxu0 %vm33_vm0, %v20_v9 }
  0xdf   :  { %v303_v13 = vpop.f32.mrb[0].mxu0 }
  0xe0   :  { %v132_v14 = vmul.f32 %v303_v13, %v26_v10  ;;  %v112_v16 = vpop.f32.mrb[1].mxu0 }
  0xe1   :  { %v131_v17 = vmul.f32 %v112_v16, %v25_v11 }
  0xe2   :  { %v136_v19 = vadd.f32 %v132_v14, %v30_v12 }
  0xe3   :  { %v135_v21 = vadd.f32 %v131_v17, %v29_v15  ;;  %v306_v23 = vpop.f32.mrb[2].mxu0 }
  0xe4   :  { %v140_v24 = vadd.f32 %v136_v19, %v18_v7  ;;  %v134_v25 = vmul.f32 %v306_v23, %v28_v18  ;;  %v122_v27 = vpop.f32.mrb[3].mxu0 }
  0xe5   :  { %v133_v28 = vmul.f32 %v122_v27, %v27_v20  ;;  %v139_v29 = vadd.f32 %v135_v21, %v17_v5 }
  0xe6   :  { %v138_v30 = vadd.f32 %v134_v25, %v32_v22  ;;  %v144_v33 = vmax.f32 %v140_v24, 0.0 }
  0xe7   :  { %v137_v31 = vadd.f32 %v133_v28, %v31_v26  ;;  %v143_v32 = vmax.f32 %v139_v29, 0.0 }
  0xe8   :  { %v142_v34 = vadd.f32 %v138_v30, %v20_v9 }
  0xe9   :  { %v141_v35 = vadd.f32 %v137_v31, %v19_v8  ;;  %315 = vmatprep.mubr.msk.f32.mxu1 %vm33_vm0, %v143_v32 }
  0xea   :  { %316 = vmatmul.mubr.msk.f32.vlgmr.msra.gmra.mrb[0].mxu1 %vm33_vm0, %v144_v33  ;;  %v146_v37 = vmax.f32 %v142_v34, 0.0 }
  0xeb   :  { %v145_v36 = vmax.f32 %v141_v35, 0.0 }
  0xed   :  { %318 = vmatprep.mubr.msk.f32.mxu1 %vm33_vm0, %v145_v36 }
  0xee   :  { %319 = vmatmul.mubr.msk.f32.gmra.mrb[2].mxu1 %vm33_vm0, %v146_v37 }
 0x1bd   :  { %v317_v38 = vpop.f32.mrb[0].mxu1 }
 0x1be   :  { %v245_v39 = vmul.f32 %v317_v38, %v26_v10  ;;  %v225_v40 = vpop.f32.mrb[1].mxu1 }
 0x1bf   :  { %v244_v41 = vmul.f32 %v225_v40, %v25_v11 }
 0x1c0   :  { %v249_v42 = vadd.f32 %v245_v39, %v30_v12 }
 0x1c1   :  { %v248_v43 = vadd.f32 %v244_v41, %v29_v15  ;;  %v320_v44 = vpop.f32.mrb[2].mxu1 }
 0x1c2   :  { %v253_v45 = vadd.f32 %v249_v42, %v144_v33  ;;  %v247_v46 = vmul.f32 %v320_v44, %v28_v18  ;;  %v235_v47 = vpop.f32.mrb[3].mxu1 }
 0x1c3   :  { %v252_v48 = vadd.f32 %v248_v43, %v143_v32  ;;  %v246_v49 = vmul.f32 %v235_v47, %v27_v20 }
 0x1c4   :  { %v257_v50 = vmax.f32 %v253_v45, 0.0  ;;  %v251_v51 = vadd.f32 %v247_v46, %v32_v22 }
 0x1c5   :  { %v256_v52 = vmax.f32 %v252_v48, 0.0  ;;  %v250_v53 = vadd.f32 %v246_v49, %v31_v26 }
 0x1c6   :  { %261 = vst.msk [vmem:[%s437_s4 + $0x8] sm:$0xff] %vm33_vm0, %v257_v50  ;;  %v255_v54 = vadd.f32 %v251_v51, %v146_v37 }
 0x1c7   :  { %260 = vst.msk [vmem:[%s437_s4] sm:$0xff] %vm33_vm0, %v256_v52  ;;  %v254_v55 = vadd.f32 %v250_v53, %v145_v36 }
 0x1c8   :  { %v259_v56 = vmax.f32 %v255_v54, 0.0 }
 0x1c9   :  { %v258_v57 = vmax.f32 %v254_v55, 0.0 }
 0x1ca   :  { %264 = vst.msk [vmem:[%s437_s4 + $0x18] sm:$0x7] %vm263_vm1, %v259_v56 }
 0x1cb   :  { %262 = vst.msk [vmem:[%s437_s4 + $0x10] sm:$0xff] %vm33_vm0, %v258_v57 }

// kernel: dprnn_block_forward.9
= control target key start
LH: loop header
LB: loop body
LE: loop exit
PB: predicated region body
PF: predicated region fallthrough
CT: control target
= control target key end

     0   :  { %vm43_vm0 = vcmask 130048   ;;  %vm141_vm1 = vcmask 261120   ;;  %vm369_vm2 = vcmask 256000   ;;  %s621_s4 = inlined_call_operand.vmem [shape: f32[16,32], index: 4, kind: input, shape index: {}]   ;;  %s622_s3 = inlined_call_operand.vmem [shape: f32[32,32], index: 3, kind: input, shape index: {}]   ;;  %s623_s1 = inlined_call_operand.vmem [shape: f32[27,16], index: 1, kind: input, shape index: {}]   ;;  %s624_s5 = inlined_call_operand.vmem [shape: f32[16,32], index: 5, kind: input, shape index: {}]   ;;  %s625_s0 = inlined_call_operand.vmem [shape: f32[27,32], index: 0, kind: input, shape index: {}]   ;;  %s626_s2 = inlined_call_operand.vmem [shape: f32[27,16], index: 2, kind: input, shape index: {}]   ;;  %s627_s6 = inlined_call_operand.vmem [shape: f32[27,32], index: 6, kind: input, shape index: {}]   ;;  %s628_s7 = inlined_call_operand.vmem [shape: f32[27,32], index: 7, kind: input, shape index: {}]   ;;  %s629_s8 = inlined_call_operand.vmem [shape: f32[27,32], index: 8, kind: output, shape index: {}]  }
   0x1   :  { %v41_v0 = vld [vmem:[%s621_s4] sm:$0xff]  ;;  %v42_v1 = vld [vmem:[%s621_s4 + $0x8] sm:$0xff]  ;;  %v35_v7 = vld [vmem:[%s622_s3 + $0x10] sm:$0xff] }
   0x2   :  { %v33_v2 = vld [vmem:[%s622_s3] sm:$0xff]  ;;  %v441_v3 = vpack.c.bf16 %v42_v1, %v41_v0  ;;  %v34_v4 = vld [vmem:[%s622_s3 + $0x8] sm:$0xff]  ;;  %v36_v8 = vld [vmem:[%s622_s3 + $0x18] sm:$0xff] }
   0x3   :  { %v37_v5 = vld [vmem:[%s623_s1] sm:$0xff]  ;;  %v445_v6 = vpack.c.bf16 %v34_v4, %v33_v2  ;;  %v449_v10 = vpack.c.bf16 %v36_v8, %v35_v7  ;;  %v244_v11 = vld [vmem:[%s624_s5 + $0x8] sm:$0xff]  ;;  %v39_v15 = vld [vmem:[%s623_s1 + $0x10] sm:$0xff] }
   0x4   :  { %411 = vmatprep.mubr.msk.f32.mxu0 %vm43_vm0, %v37_v5  ;;  %v243_v9 = vld [vmem:[%s624_s5] sm:$0xff]  ;;  %442 = vmatprep.subr.bf16.mxu0 %v441_v3  ;;  %v38_v13 = vld [vmem:[%s623_s1 + $0x8] sm:$0xff]  ;;  %v40_v16 = vld [vmem:[%s623_s1 + $0x18] sm:$0x7] }
   0x5   :  { %v29_v12 = vld [vmem:[%s625_s0] sm:$0xff]  ;;  %446 = vmatprep.subr.bf16.mxu1 %v445_v6  ;;  %444 = vmatpush3.bf16.msra.mxu0 %v441_v3  ;;  %v453_v14 = vpack.c.bf16 %v244_v11, %v243_v9  ;;  %v30_v17 = vld [vmem:[%s625_s0 + $0x8] sm:$0xff]  ;;  %v31_v19 = vld [vmem:[%s625_s0 + $0x10] sm:$0xff] }
   0x6   :  { %448 = vmatpush3.bf16.msra.mxu1 %v445_v6  ;;  %425 = vmatprep.mubr.msk.f32.mxu1 %vm141_vm1, %v29_v12  ;;  %v239_v18 = vld [vmem:[%s626_s2] sm:$0xff]  ;;  %v240_v20 = vld [vmem:[%s626_s2 + $0x8] sm:$0xff]  ;;  %v32_v21 = vld [vmem:[%s625_s0 + $0x18] sm:$0x7] }
   0x7   :  { %450 = vmatprep.subr.bf16.mxu1 %v449_v10  ;;  %454 = vmatprep.subr.bf16.mxu0 %v453_v14  ;;  %v241_v22 = vld [vmem:[%s626_s2 + $0x10] sm:$0xff]  ;;  %v242_v23 = vld [vmem:[%s626_s2 + $0x18] sm:$0x7]  ;;  %v347_v33 = vld [vmem:[%s627_s6 + $0x8] sm:$0xff] }
   0x8   :  { %412 = vmatmul.mubr.msk.f32.vlgmr.msra.gmra.mrb[0].mxu0 %vm43_vm0, %v38_v13  ;;  %v346_v37 = vld [vmem:[%s627_s6] sm:$0xff]  ;;  %v355_v39 = vld [vmem:[%s628_s7 + $0x8] sm:$0xff]  ;;  %v349_v47 = vld [vmem:[%s627_s6 + $0x18] sm:$0x7] }
   0x9   :  { %456 = vmatpush3.bf16.msra.mxu0 %v453_v14  ;;  %414 = vmatprep.mubr.msk.f32.mxu0 %vm43_vm0, %v39_v15  ;;  %v354_v44 = vld [vmem:[%s628_s7] sm:$0xff]  ;;  %v348_v51 = vld [vmem:[%s627_s6 + $0x10] sm:$0xff]  ;;  %v357_v53 = vld [vmem:[%s628_s7 + $0x18] sm:$0x7] }
   0xa   :  { %452 = vmatpush3.bf16.msra.mxu1 %v449_v10  ;;  %v356_v57 = vld [vmem:[%s628_s7 + $0x10] sm:$0xff] }
   0xc   :  { %415 = vmatmul.mubr.msk.f32.gmra.mrb[2].mxu0 %vm43_vm0, %v40_v16 }
   0xd   :  { %426 = vmatmul.mubr.msk.f32.vlgmr.msra.gmra.mrb[0].mxu1 %vm141_vm1, %v30_v17  ;;  %435 = vmatprep.mubr.msk.f32.mxu0 %vm43_vm0, %v239_v18 }
   0xe   :  { %428 = vmatprep.mubr.msk.f32.mxu1 %vm141_vm1, %v31_v19 }
  0x10   :  { %436 = vmatmul.mubr.msk.f32.vlgmr.msra.gmra.mrb[4].mxu0 %vm43_vm0, %v240_v20 }
  0x11   :  { %429 = vmatmul.mubr.msk.f32.gmra.mrb[2].mxu1 %vm141_vm1, %v32_v21  ;;  %438 = vmatprep.mubr.msk.f32.mxu0 %vm43_vm0, %v241_v22 }
  0x14   :  { %439 = vmatmul.mubr.msk.f32.gmra.mrb[6].mxu0 %vm43_vm0, %v242_v23 }
  0xdb   :  { %v413_v24 = vpop.f32.mrb[0].mxu0 }
  0xdc   :  { %v122_v25 = vpop.f32.mrb[1].mxu0 }
  0xdf   :  { %v416_v26 = vpop.f32.mrb[2].mxu0 }
  0xe0   :  { %v427_v27 = vpop.f32.mrb[0].mxu1  ;;  %v132_v28 = vpop.f32.mrb[3].mxu0 }
  0xe1   :  { %v226_v29 = vadd.f32 %v427_v27, %v413_v24  ;;  %v220_v30 = vpop.f32.mrb[1].mxu1 }
  0xe2   :  { %v221_v31 = vadd.f32 %v220_v30, %v122_v25 }
  0xe3   :  { %v437_v32 = vpop.f32.mrb[4].mxu0 }
  0xe4   :  { %v430_v34 = vpop.f32.mrb[2].mxu1  ;;  %v343_v35 = vadd.f32 %v437_v32, %v226_v29  ;;  %v323_v36 = vpop.f32.mrb[5].mxu0 }
  0xe5   :  { %v236_v38 = vadd.f32 %v430_v34, %v416_v26  ;;  %v230_v40 = vpop.f32.mrb[3].mxu1  ;;  %v342_v41 = vadd.f32 %v323_v36, %v221_v31 }
  0xe6   :  { %v351_v42 = vmul.f32 %v347_v33, %v343_v35  ;;  %v231_v43 = vadd.f32 %v230_v40, %v132_v28 }
  0xe7   :  { %v350_v45 = vmul.f32 %v346_v37, %v342_v41  ;;  %v440_v46 = vpop.f32.mrb[6].mxu0 }
  0xe8   :  { %v359_v48 = vadd.f32 %v355_v39, %v351_v42  ;;  %v345_v49 = vadd.f32 %v440_v46, %v236_v38  ;;  %v333_v50 = vpop.f32.mrb[7].mxu0 }
  0xe9   :  { %v358_v52 = vadd.f32 %v354_v44, %v350_v45  ;;  %v344_v54 = vadd.f32 %v333_v50, %v231_v43 }
  0xea   :  { %v363_v55 = vmax.f32 %v359_v48, 0.0  ;;  %v353_v56 = vmul.f32 %v349_v47, %v345_v49 }
  0xeb   :  { %v362_v58 = vmax.f32 %v358_v52, 0.0  ;;  %v352_v59 = vmul.f32 %v348_v51, %v344_v54 }
  0xec   :  { %367 = vst.msk [vmem:[%s629_s8 + $0x8] sm:$0xff] %vm141_vm1, %v363_v55  ;;  %v361_v60 = vadd.f32 %v357_v53, %v353_v56 }
  0xed   :  { %366 = vst.msk [vmem:[%s629_s8] sm:$0xff] %vm141_vm1, %v362_v58  ;;  %v360_v61 = vadd.f32 %v356_v57, %v352_v59 }
  0xee   :  { %v365_v62 = vmax.f32 %v361_v60, 0.0 }
  0xef   :  { %v364_v63 = vmax.f32 %v360_v61, 0.0 }
  0xf0   :  { %370 = vst.msk [vmem:[%s629_s8 + $0x18] sm:$0x7] %vm369_vm2, %v365_v62 }
  0xf1   :  { %368 = vst.msk [vmem:[%s629_s8 + $0x10] sm:$0xff] %vm141_vm1, %v364_v63 }

// kernel: dprnn_block_forward.10
= control target key start
LH: loop header
LB: loop body
LE: loop exit
PB: predicated region body
PF: predicated region fallthrough
CT: control target
= control target key end

     0   :  { %vm92_vm0 = vcmask 1040384   ;;  %vm55_vm1 = vcmask 72704   ;;  %vm605_vm2 = vmmov 1   ;;  %s1025_s1 = inlined_call_operand.vmem [shape: f32[9,9], index: 1, kind: input, shape index: {}]   ;;  %s1026_s0 = inlined_call_operand.vmem [shape: f32[96,9], index: 0, kind: input, shape index: {}]   ;;  %s1027_s2 = inlined_call_operand.vmem [shape: f32[96,9], index: 2, kind: input, shape index: {}]   ;;  %s1028_s3 = inlined_call_operand.vmem [shape: f32[96,9], index: 3, kind: input, shape index: {}]   ;;  %s1029_s4 = inlined_call_operand.vmem [shape: f32[96,9], index: 4, kind: output, shape index: {}]  }
   0x1   :  { %v29_v0 = vld [vmem:[%s1025_s1] sm:$0xff]  ;;  %v30_v1 = vld [vmem:[%s1025_s1 + $0x8] sm:$0x1]  ;;  %vm593_vm3 = vmpackc.low %vm92_vm0, %vm605_vm2 }
   0x2   :  { %v592_v2 = vpack.c.bf16 %v30_v1, %v29_v0  ;;  %v17_v3 = vld [vmem:[%s1026_s0] sm:$0xff]  ;;  %v18_v4 = vld [vmem:[%s1026_s0 + $0x8] sm:$0xff]  ;;  %v19_v5 = vld [vmem:[%s1026_s0 + $0x10] sm:$0xff] }
   0x3   :  { %552 = vmatprep.mubr.msk.f32.mxu0 %vm55_vm1, %v17_v3  ;;  %v20_v6 = vld [vmem:[%s1026_s0 + $0x18] sm:$0xff]  ;;  %v655_v7 = vld [vmem:[%s1026_s0 + $0x20] sm:$0xff]  ;;  %v22_v8 = vld [vmem:[%s1026_s0 + $0x28] sm:$0xff] }
   0x4   :  { %594 = vmatprep.subr.msk.bf16.mxu0 %vm593_vm3, %v592_v2  ;;  %600 = vmatprep.subr.msk.bf16.mxu1 %vm593_vm3, %v592_v2  ;;  %v666_v9 = vld [vmem:[%s1026_s0 + $0x30] sm:$0xff]  ;;  %v674_v10 = vld [vmem:[%s1026_s0 + $0x38] sm:$0xff]  ;;  %v679_v11 = vld [vmem:[%s1026_s0 + $0x40] sm:$0xff] }
   0x5   :  { %597 = vmatpush3.bf16.msk.msra.mxu0 %vm593_vm3, %v592_v2  ;;  %603 = vmatpush3.bf16.msk.msra.mxu1 %vm593_vm3, %v592_v2  ;;  %v688_v12 = vld [vmem:[%s1026_s0 + $0x48] sm:$0xff]  ;;  %v693_v13 = vld [vmem:[%s1026_s0 + $0x50] sm:$0xff]  ;;  %v702_v14 = vld [vmem:[%s1026_s0 + $0x58] sm:$0xff] }
   0x6   :  { %v709_v15 = vld [vmem:[%s1027_s2 + $0x8] sm:$0xff]  ;;  %v714_v16 = vld [vmem:[%s1027_s2] sm:$0xff]  ;;  %v731_v23 = vld [vmem:[%s1027_s2 + $0x18] sm:$0xff] }
   0x7   :  { %v719_v17 = vld [vmem:[%s1028_s3 + $0x8] sm:$0xff]  ;;  %v725_v20 = vld [vmem:[%s1028_s3] sm:$0xff]  ;;  %v737_v25 = vld [vmem:[%s1027_s2 + $0x10] sm:$0xff] }
   0x8   :  { %553 = vmatmul.mubr.msk.f32.vlgmr.msra.gmra.mrb[0].mxu0 %vm55_vm1, %v18_v4  ;;  %v743_v27 = vld [vmem:[%s1028_s3 + $0x18] sm:$0xff]  ;;  %v751_v31 = vld [vmem:[%s1028_s3 + $0x10] sm:$0xff]  ;;  %v757_v34 = vld [vmem:[%s1027_s2 + $0x28] sm:$0xff] }
   0x9   :  { %555 = vmatprep.mubr.msk.f32.mxu0 %vm55_vm1, %v19_v5  ;;  %v765_v37 = vld [vmem:[%s1027_s2 + $0x20] sm:$0xff]  ;;  %v771_v39 = vld [vmem:[%s1028_s3 + $0x28] sm:$0xff]  ;;  %v792_v49 = vld [vmem:[%s1027_s2 + $0x38] sm:$0xff] }
   0xa   :  { %v781_v45 = vld [vmem:[%s1028_s3 + $0x20] sm:$0xff]  ;;  %v801_v51 = vld [vmem:[%s1027_s2 + $0x30] sm:$0xff]  ;;  %v808_v54 = vld [vmem:[%s1028_s3 + $0x38] sm:$0xff] }
   0xb   :  { %v817_v59 = vld [vmem:[%s1028_s3 + $0x30] sm:$0xff]  ;;  %v829_v63 = vld [vmem:[%s1027_s2 + $0x48] sm:$0xff]  ;;  %v838_v1 = vld [vmem:[%s1027_s2 + $0x40] sm:$0xff] }
   0xc   :  { %556 = vmatmul.mubr.msk.f32.gmra.mrb[2].mxu0 %vm55_vm1, %v20_v6 }
   0xd   :  { %558 = vmatprep.mubr.msk.f32.mxu0 %vm55_vm1, %v655_v7 }
  0x10   :  { %559 = vmatmul.mubr.msk.f32.gmra.mrb[4].mxu0 %vm55_vm1, %v22_v8 }
  0x11   :  { %561 = vmatprep.mubr.msk.f32.mxu0 %vm55_vm1, %v666_v9 }
  0x14   :  { %562 = vmatmul.mubr.msk.f32.gmra.mrb[6].mxu0 %vm55_vm1, %v674_v10 }
  0x15   :  { %564 = vmatprep.mubr.msk.f32.mxu0 %vm55_vm1, %v679_v11 }
  0x18   :  { %565 = vmatmul.mubr.msk.f32.gmra.mrb[8].mxu0 %vm55_vm1, %v688_v12 }
  0x19   :  { %567 = vmatprep.mubr.msk.f32.mxu0 %vm55_vm1, %v693_v13 }
  0x1c   :  { %568 = vmatmul.mubr.msk.f32.gmra.mrb[10].mxu0 %vm55_vm1, %v702_v14 }
  0xdb   :  { %v554_v18 = vpop.f32.mrb[0].mxu0 }
  0xdc   :  { %v222_v19 = vmul.f32 %v554_v18, %v709_v15  ;;  %v162_v21 = vpop.f32.mrb[1].mxu0  ;;  %v855_v18 = vld [vmem:[%s1028_s3 + $0x40] sm:$0xff] }
  0xdd   :  { %v221_v22 = vmul.f32 %v162_v21, %v714_v16 }
  0xde   :  { %v234_v24 = vadd.f32 %v222_v19, %v719_v17 }
  0xdf   :  { %v233_v26 = vadd.f32 %v221_v22, %v725_v20  ;;  %v557_v28 = vpop.f32.mrb[2].mxu0 }
  0xe0   :  { %v745_v29 = vadd.f32 %v234_v24, %v18_v4  ;;  %v224_v30 = vmul.f32 %v557_v28, %v731_v23  ;;  %v172_v32 = vpop.f32.mrb[3].mxu0  ;;  %v845_v4 = vld [vmem:[%s1028_s3 + $0x48] sm:$0xff] }
  0xe1   :  { %v223_v33 = vmul.f32 %v172_v32, %v737_v25  ;;  %v759_v35 = vadd.f32 %v233_v26, %v17_v3 }
  0xe2   :  { %v236_v36 = vadd.f32 %v224_v30, %v743_v27  ;;  %v258_v42 = vmax.f32 %v745_v29, 0.0  ;;  %v883_v30 = vld [vmem:[%s1028_s3 + $0x58] sm:$0xff] }
  0xe3   :  { %v235_v38 = vadd.f32 %v223_v33, %v751_v31  ;;  %v560_v40 = vpop.f32.mrb[4].mxu0  ;;  %v257_v41 = vmax.f32 %v759_v35, 0.0 }
  0xe4   :  { %v775_v43 = vadd.f32 %v236_v36, %v20_v6  ;;  %v226_v44 = vmul.f32 %v560_v40, %v757_v34  ;;  %v182_v46 = vpop.f32.mrb[5].mxu0  ;;  %v893_v40 = vld [vmem:[%s1028_s3 + $0x50] sm:$0xff] }
  0xe5   :  { %v783_v47 = vadd.f32 %v235_v38, %v19_v5  ;;  %v225_v48 = vmul.f32 %v182_v46, %v765_v37  ;;  %574 = vmatprep.mubr.msk.f32.mxu1 %vm55_vm1, %v257_v41 }
  0xe6   :  { %v238_v50 = vadd.f32 %v226_v44, %v771_v39  ;;  %575 = vmatmul.mubr.msk.f32.vlgmr.msra.gmra.mrb[0].mxu1 %vm55_vm1, %v258_v42  ;;  %v260_v56 = vmax.f32 %v775_v43, 0.0 }
  0xe7   :  { %v259_v52 = vmax.f32 %v783_v47, 0.0  ;;  %v237_v53 = vadd.f32 %v225_v48, %v781_v45  ;;  %v563_v55 = vpop.f32.mrb[6].mxu0 }
  0xe8   :  { %v811_v57 = vadd.f32 %v238_v50, %v22_v8  ;;  %v228_v58 = vmul.f32 %v563_v55, %v792_v49  ;;  %v192_v60 = vpop.f32.mrb[7].mxu0 }
  0xe9   :  { %v820_v61 = vadd.f32 %v237_v53, %v655_v7  ;;  %v227_v62 = vmul.f32 %v192_v60, %v801_v51  ;;  %577 = vmatprep.mubr.msk.f32.mxu1 %vm55_vm1, %v259_v52 }
  0xea   :  { %v240_v0 = vadd.f32 %v228_v58, %v808_v54  ;;  %578 = vmatmul.mubr.msk.f32.gmra.mrb[2].mxu1 %vm55_vm1, %v260_v56  ;;  %v262_v6 = vmax.f32 %v811_v57, 0.0 }
  0xeb   :  { %v261_v2 = vmax.f32 %v820_v61, 0.0  ;;  %v239_v3 = vadd.f32 %v227_v62, %v817_v59  ;;  %v566_v5 = vpop.f32.mrb[8].mxu0 }
  0xec   :  { %v849_v7 = vadd.f32 %v240_v0, %v674_v10  ;;  %v230_v8 = vmul.f32 %v566_v5, %v829_v63  ;;  %v202_v19 = vpop.f32.mrb[9].mxu0  ;;  %v867_v10 = vld [vmem:[%s1027_s2 + $0x58] sm:$0xff] }
  0xed   :  { %v858_v21 = vadd.f32 %v239_v3, %v666_v9  ;;  %v229_v22 = vmul.f32 %v202_v19, %v838_v1  ;;  %580 = vmatprep.mubr.msk.f32.mxu1 %vm55_vm1, %v261_v2  ;;  %v876_v9 = vld [vmem:[%s1027_s2 + $0x50] sm:$0xff] }
  0xee   :  { %v242_v24 = vadd.f32 %v230_v8, %v845_v4  ;;  %581 = vmatmul.mubr.msk.f32.gmra.mrb[4].mxu1 %vm55_vm1, %v262_v6  ;;  %v264_v33 = vmax.f32 %v849_v7, 0.0 }
  0xef   :  { %v263_v26 = vmax.f32 %v858_v21, 0.0  ;;  %v241_v28 = vadd.f32 %v229_v22, %v855_v18  ;;  %v569_v32 = vpop.f32.mrb[10].mxu0 }
  0xf0   :  { %v887_v36 = vadd.f32 %v242_v24, %v688_v12  ;;  %v232_v38 = vmul.f32 %v569_v32, %v867_v10  ;;  %v212_v44 = vpop.f32.mrb[11].mxu0 }
  0xf1   :  { %v896_v46 = vadd.f32 %v241_v28, %v679_v11  ;;  %v231_v48 = vmul.f32 %v212_v44, %v876_v9  ;;  %583 = vmatprep.mubr.msk.f32.mxu1 %vm55_vm1, %v263_v26 }
  0xf2   :  { %v244_v12 = vadd.f32 %v232_v38, %v883_v30  ;;  %584 = vmatmul.mubr.msk.f32.gmra.mrb[6].mxu1 %vm55_vm1, %v264_v33  ;;  %v266_v55 = vmax.f32 %v887_v36, 0.0 }
  0xf3   :  { %v265_v50 = vmax.f32 %v896_v46, 0.0  ;;  %v243_v53 = vadd.f32 %v231_v48, %v893_v40 }
  0xf4   :  { %v910_v11 = vadd.f32 %v244_v12, %v702_v14 }
  0xf5   :  { %v913_v58 = vadd.f32 %v243_v53, %v693_v13  ;;  %586 = vmatprep.mubr.msk.f32.mxu1 %vm55_vm1, %v265_v50 }
  0xf6   :  { %587 = vmatmul.mubr.msk.f32.gmra.mrb[8].mxu1 %vm55_vm1, %v266_v55  ;;  %v268_v62 = vmax.f32 %v910_v11, 0.0 }
  0xf7   :  { %v267_v60 = vmax.f32 %v913_v58, 0.0 }
  0xf9   :  { %589 = vmatprep.mubr.msk.f32.mxu1 %vm55_vm1, %v267_v60 }
  0xfa   :  { %590 = vmatmul.mubr.msk.f32.gmra.mrb[10].mxu1 %vm55_vm1, %v268_v62 }
 0x1b9   :  { %v576_v13 = vpop.f32.mrb[0].mxu1 }
 0x1ba   :  { %v431_v14 = vmul.f32 %v576_v13, %v709_v15  ;;  %v371_v0 = vpop.f32.mrb[1].mxu1 }
 0x1bb   :  { %v430_v3 = vmul.f32 %v371_v0, %v714_v16 }
 0x1bc   :  { %v443_v5 = vadd.f32 %v431_v14, %v719_v17 }
 0x1bd   :  { %v442_v8 = vadd.f32 %v430_v3, %v725_v20  ;;  %v579_v19 = vpop.f32.mrb[2].mxu1 }
 0x1be   :  { %v455_v22 = vadd.f32 %v443_v5, %v258_v42  ;;  %v433_v24 = vmul.f32 %v579_v19, %v731_v23  ;;  %v381_v28 = vpop.f32.mrb[3].mxu1 }
 0x1bf   :  { %v454_v32 = vadd.f32 %v442_v8, %v257_v41  ;;  %v432_v38 = vmul.f32 %v381_v28, %v737_v25 }
 0x1c0   :  { %v467_v15 = vmax.f32 %v455_v22, 0.0  ;;  %v445_v44 = vadd.f32 %v433_v24, %v743_v27 }
 0x1c1   :  { %v466_v16 = vmax.f32 %v454_v32, 0.0  ;;  %v444_v17 = vadd.f32 %v432_v38, %v751_v31  ;;  %v582_v48 = vpop.f32.mrb[4].mxu1 }
 0x1c2   :  { %479 = vst.msk [vmem:[%s1029_s4 + $0x8] sm:$0xff] %vm55_vm1, %v467_v15  ;;  %v457_v20 = vadd.f32 %v445_v44, %v260_v56  ;;  %v435_v23 = vmul.f32 %v582_v48, %v757_v34  ;;  %v391_v29 = vpop.f32.mrb[5].mxu1 }
 0x1c3   :  { %478 = vst.msk [vmem:[%s1029_s4] sm:$0xff] %vm55_vm1, %v466_v16  ;;  %v456_v25 = vadd.f32 %v444_v17, %v259_v52  ;;  %v434_v27 = vmul.f32 %v391_v29, %v765_v37 }
 0x1c4   :  { %v469_v31 = vmax.f32 %v457_v20, 0.0  ;;  %v447_v35 = vadd.f32 %v435_v23, %v771_v39 }
 0x1c5   :  { %v468_v41 = vmax.f32 %v456_v25, 0.0  ;;  %v446_v42 = vadd.f32 %v434_v27, %v781_v45  ;;  %v585_v43 = vpop.f32.mrb[6].mxu1 }
 0x1c6   :  { %481 = vst.msk [vmem:[%s1029_s4 + $0x18] sm:$0xff] %vm55_vm1, %v469_v31  ;;  %v459_v34 = vadd.f32 %v447_v35, %v262_v6  ;;  %v437_v47 = vmul.f32 %v585_v43, %v792_v49  ;;  %v401_v52 = vpop.f32.mrb[7].mxu1 }
 0x1c7   :  { %480 = vst.msk [vmem:[%s1029_s4 + $0x10] sm:$0xff] %vm55_vm1, %v468_v41  ;;  %v458_v37 = vadd.f32 %v446_v42, %v261_v2  ;;  %v436_v39 = vmul.f32 %v401_v52, %v801_v51 }
 0x1c8   :  { %v471_v45 = vmax.f32 %v459_v34, 0.0  ;;  %v449_v56 = vadd.f32 %v437_v47, %v808_v54 }
 0x1c9   :  { %v470_v12 = vmax.f32 %v458_v37, 0.0  ;;  %v448_v57 = vadd.f32 %v436_v39, %v817_v59  ;;  %v588_v6 = vpop.f32.mrb[8].mxu1 }
 0x1ca   :  { %483 = vst.msk [vmem:[%s1029_s4 + $0x28] sm:$0xff] %vm55_vm1, %v471_v45  ;;  %v461_v49 = vadd.f32 %v449_v56, %v264_v33  ;;  %v439_v61 = vmul.f32 %v588_v6, %v829_v63  ;;  %v411_v2 = vpop.f32.mrb[9].mxu1 }
 0x1cb   :  { %482 = vst.msk [vmem:[%s1029_s4 + $0x20] sm:$0xff] %vm55_vm1, %v470_v12  ;;  %v460_v51 = vadd.f32 %v448_v57, %v263_v26  ;;  %v438_v54 = vmul.f32 %v411_v2, %v838_v1 }
 0x1cc   :  { %v473_v59 = vmax.f32 %v461_v49, 0.0  ;;  %v451_v53 = vadd.f32 %v439_v61, %v845_v4 }
 0x1cd   :  { %v472_v13 = vmax.f32 %v460_v51, 0.0  ;;  %v450_v7 = vadd.f32 %v438_v54, %v855_v18  ;;  %v591_v33 = vpop.f32.mrb[10].mxu1 }
 0x1ce   :  { %485 = vst.msk [vmem:[%s1029_s4 + $0x38] sm:$0xff] %vm55_vm1, %v473_v59  ;;  %v463_v63 = vadd.f32 %v451_v53, %v266_v55  ;;  %v441_v21 = vmul.f32 %v591_v33, %v867_v10  ;;  %v421_v26 = vpop.f32.mrb[11].mxu1 }
 0x1cf   :  { %484 = vst.msk [vmem:[%s1029_s4 + $0x30] sm:$0xff] %vm55_vm1, %v472_v13  ;;  %v462_v1 = vadd.f32 %v450_v7, %v265_v50  ;;  %v440_v4 = vmul.f32 %v421_v26, %v876_v9 }
 0x1d0   :  { %v475_v18 = vmax.f32 %v463_v63, 0.0  ;;  %v453_v14 = vadd.f32 %v441_v21, %v883_v30 }
 0x1d1   :  { %v474_v0 = vmax.f32 %v462_v1, 0.0  ;;  %v452_v36 = vadd.f32 %v440_v4, %v893_v40 }
 0x1d2   :  { %487 = vst.msk [vmem:[%s1029_s4 + $0x48] sm:$0xff] %vm55_vm1, %v475_v18  ;;  %v465_v10 = vadd.f32 %v453_v14, %v268_v62 }
 0x1d3   :  { %486 = vst.msk [vmem:[%s1029_s4 + $0x40] sm:$0xff] %vm55_vm1, %v474_v0  ;;  %v464_v9 = vadd.f32 %v452_v36, %v267_v60 }
 0x1d4   :  { %v477_v30 = vmax.f32 %v465_v10, 0.0 }
 0x1d5   :  { %v476_v46 = vmax.f32 %v464_v9, 0.0 }
 0x1d6   :  { %489 = vst.msk [vmem:[%s1029_s4 + $0x58] sm:$0xff] %vm55_vm1, %v477_v30 }
 0x1d7   :  { %488 = vst.msk [vmem:[%s1029_s4 + $0x50] sm:$0xff] %vm55_vm1, %v476_v46 }

// kernel: dprnn_block_forward.8
= control target key start
LH: loop header
LB: loop body
LE: loop exit
PB: predicated region body
PF: predicated region fallthrough
CT: control target
= control target key end

     0   :  { %s728_s18 = smov 0   ;;  %s779_s0 = inlined_call_operand.vmem [shape: f32[9,3,64], index: 0, kind: input, shape index: {}]   ;;  %s780_s1 = inlined_call_operand.vmem [shape: f32[9,3,64], index: 1, kind: input, shape index: {}]   ;;  %s781_s2 = inlined_call_operand.vmem [shape: f32[16,64], index: 2, kind: input, shape index: {}]   ;;  %s782_s3 = inlined_call_operand.vmem [shape: f32[16,64], index: 3, kind: input, shape index: {}]   ;;  %s783_s4 = inlined_call_operand.vmem [shape: f32[9,3,16], index: 4, kind: output, shape index: {0}]   ;;  %s784_s5 = inlined_call_operand.vmem [shape: f32[9,3,16], index: 5, kind: output, shape index: {1}]  }
   0x1 LB: > { %s606_s19 = sadd.s32 4294967295, %s687_s18   ;;  %p610_p0 = scmp.ge.s32.totalorder %s687_s18, 1  ;;  %s687_s18 = sphi %s728_s18, %s16_s18  }
   0x2   : > { %p204_p1 = scmp.lt.s32.totalorder %s687_s18, 10 }
   0x4   : > { %p205_p2 = pnand %p610_p0, %p204_p1 }
   0x5   : > { %p240_p3 = scmp.lt.s32.totalorder (!%p205_p2), %s606_s19, 8  ;;  %s244_s20 = ssub.s32 (!%p205_p2), 8, %s606_s19 }
   0x6   : > { %208 = sbr.rel (%p205_p2) target bundleno = 734 (0x2de), region = 36  ;;  %p245_p4 = scmp.lt.s32.totalorder (!%p205_p2), %s244_s20, 8 }
   0x7   : > { %p615_p5 = scmp.ne.s32.totalorder (!%p205_p2), %s606_s19, 0 }
   0xd   : > { %s241_s21 = scalar_select %p240_p3, %s606_s19, 8 }
   0xe   : > { %s786_s20 = smov (!%p245_p4, %s244_s20), 8  ;;  %263 = sbr.rel (%p615_p5) target bundleno = 21 (0x15), region = 40 }
   0xf   : > { %s611_s22 = sshll.u32 %s241_s21, 2  ;;  %s612_s26 = sshll.u32 %s786_s20, 2  ;;  %vm264_vm0 = vcmask (!%p615_p5), 124928   ;;  %v689_v0 = vmov (!%p615_p5), 0.0  }
  0x10   : > { %s739_s25 = scalar_lea.vmem %s779_s0, %s611_s22  ;;  %s744_s29 = scalar_lea.vmem %s780_s1, %s612_s26  ;;  %265 = vst.msk [vmem:[#allocation2] sm:$0x7] (!%p615_p5), %vm264_vm0, %v689_v0  ;;  %266 = vst.msk [vmem:[#allocation3] sm:$0x7] (!%p615_p5), %vm264_vm0, %v689_v0 }
  0x11   : > { %s749_s7 = scalar_lea.vmem %s783_s4, %s611_s22  ;;  %s754_s10 = scalar_lea.vmem %s784_s5, %s612_s26  ;;  %267 = vst.msk [vmem:[#allocation4] sm:$0x7] (!%p615_p5), %vm264_vm0, %v689_v0  ;;  %268 = vst.msk [vmem:[#allocation5] sm:$0x7] (!%p615_p5), %vm264_vm0, %v689_v0 }
  0x15 PF: > { %v271_v1 = vld [vmem:[%s781_s2] sm:$0xff]  ;;  %v272_v2 = vld [vmem:[%s781_s2 + $0x8] sm:$0xff]  ;;  %v690_v3 = vmov 0.0|0.0   ;;  %vm691_vm1 = vmmov 0   ;;  %v692_v5 = vmov 0.0   ;;  %vm273_vm2 = vcmask 130048  }
  0x16   : > { %642 = vmatprep.subr.bf16.mxu0 %v690_v3  ;;  %v643_v4 = vpack.c.bf16 %v272_v2, %v271_v1  ;;  %632 = vmatprep.mubr.msk.f32.mxu0 %vm691_vm1, %v692_v5  ;;  %v379_v6 = vld [vmem:[%s782_s3] sm:$0xff]  ;;  %v380_v7 = vld [vmem:[%s782_s3 + $0x8] sm:$0xff]  ;;  %s693_s20 = smov 16   ;;  %s694_s21 = smov 96   ;;  %vm488_vm3 = vcmask 124928  }
  0x17   : > { %645 = vmatprep.subr.bf16.mxu1 %v690_v3  ;;  %v646_v8 = vpack.c.bf16 %v380_v7, %v379_v6  ;;  %639 = vmatprep.mubr.msk.f32.mxu1 %vm691_vm1, %v692_v5  ;;  %v348_v9 = vld [vmem:[#allocation3] sm:$0x7]  ;;  %v270_v10 = vld [vmem:[#allocation2] sm:$0x7]  ;;  %s695_s22 = smov 32   ;;  %s696_s23 = smov 112  }
  0x18   : > { %644 = vmatpush3.bf16.msra.mxu0 %v643_v4  ;;  %357 = vrot.lane.b32.xlu1 %v348_v9, %s693_s20  ;;  %v378_v11 = vld [vmem:[#allocation4] sm:$0x7]  ;;  %v455_v12 = vld [vmem:[#allocation5] sm:$0x7]  ;;  %v269_v13 = vld [vmem:[%s739_s25] sm:$0x7] }
  0x19   : > { %647 = vmatpush3.bf16.msra.mxu1 %v646_v8  ;;  %v377_v14 = vld [vmem:[%s744_s29] sm:$0x7]  ;;  %s697_s24 = smov 80  }
  0x1b   : > { %633 = vmatmul.mubr.msk.f32.vlgmr.msra.gmra.mrb[0].mxu0 %vm273_vm2, %v270_v10 }
  0x1c   : > { %640 = vmatmul.mubr.msk.f32.vlgmr.msra.gmra.mrb[0].mxu1 %vm273_vm2, %v378_v11  ;;  %464 = vrot.lane.b32.xlu1 %v455_v12, %s693_s20 }
  0x8a   : > { %v358_v35 = vpop.permute.xlu1 %357 }
  0x8e   : > { %v465_v37 = vpop.permute.xlu1 %464 }
  0xee   : > { %v343_v15 = vpop.f32.mrb[0].mxu0 }
  0xef   : > { %v347_v16 = vadd.f32 %v343_v15, %v269_v13  ;;  %v634_v17 = vpop.f32.mrb[1].mxu0  ;;  %v450_v18 = vpop.f32.mrb[0].mxu1 }
  0xf0   : > { %v454_v19 = vadd.f32 %v450_v18, %v377_v14  ;;  %v641_v20 = vpop.f32.mrb[1].mxu1 }
  0xf1   : > { %665 = vtanh.f32 %v347_v16  ;;  %v617_v23 = vmul.f32 -1.442695, %v347_v16 }
  0xf2   : > { %667 = vtanh.f32 %v454_v19  ;;  %v619_v24 = vmul.f32 -1.442695, %v454_v19 }
  0xf3   : > { %669 = vpow2.f32 %v617_v23 }
  0xf4   : > { %671 = vpow2.f32 %v619_v24 }
  0xfb   : > { %v666_v21 = vpop.eup %665 }
  0xfc   : > { %362 = vrot.lane.b32.xlu0 %v666_v21, %s694_s21  ;;  %v668_v22 = vpop.eup %667 }
  0xfd   : > { %v670_v25 = vpop.eup %669 }
  0xfe   : > { %v352_v26 = vadd.f32 1.0, %v670_v25  ;;  %v672_v27 = vpop.eup %671 }
  0xff   : > { %v459_v28 = vadd.f32 1.0, %v672_v27 }
 0x100   : > { %469 = vrot.lane.b32.xlu0 %v668_v22, %s694_s21  ;;  %673 = vrcp.f32 %v352_v26 }
 0x101   : > { %675 = vrcp.f32 %v459_v28 }
 0x10a   : > { %v674_v29 = vpop.eup %673 }
 0x10b   : > { %v676_v32 = vpop.eup %675  ;;  %v360_v36 = vmul.f32 %v674_v29, %v358_v35 }
 0x10c   : > { %v467_v40 = vmul.f32 %v676_v32, %v465_v37 }
 0x16e   : > { %v363_v30 = vpop.permute.xlu0 %362 }
 0x16f   : > { %v365_v31 = vmul.f32 %v674_v29, %v363_v30 }
 0x171   : > { %367 = vrot.lane.b32.xlu0 %v365_v31, %s693_s20 }
 0x172   : > { %v470_v33 = vpop.permute.xlu0 %469 }
 0x173   : > { %v472_v34 = vmul.f32 %v676_v32, %v470_v33 }
 0x175   : > { %474 = vrot.lane.b32.xlu1 %v472_v34, %s693_s20 }
 0x1e3   : > { %v368_v38 = vpop.permute.xlu0 %367 }
 0x1e4   : > { %v370_v39 = vadd.f32 %v368_v38, %v360_v36 }
 0x1e6   : > { %677 = vtanh.f32 %v370_v39 }
 0x1e7   : > { %v475_v41 = vpop.permute.xlu1 %474 }
 0x1e8   : > { %v477_v42 = vadd.f32 %v475_v41, %v467_v40 }
 0x1ea   : > { %679 = vtanh.f32 %v477_v42 }
 0x1f0   : > { %v678_v43 = vpop.eup %677 }
 0x1f1   : > { %373 = vrot.lane.b32.xlu0 %v678_v43, %s695_s22 }
 0x1f4   : > { %v680_v44 = vpop.eup %679 }
 0x1f5   : > { %480 = vrot.lane.b32.xlu1 %v680_v44, %s695_s22 }
 0x1f9   : > { %491 = vrot.lane.b32.xlu1 %v370_v39, %s696_s23 }
 0x1fd   : > { %501 = vrot.lane.b32.xlu1 %v477_v42, %s696_s23 }
 0x263   : > { %v374_v45 = vpop.permute.xlu0 %373 }
 0x264   : > { %v376_v46 = vmul.f32 %v674_v29, %v374_v45 }
 0x266   : > { %485 = vrot.lane.b32.xlu0 %v376_v46, %s697_s24 }
 0x267   : > { %v481_v47 = vpop.permute.xlu1 %480 }
 0x268   : > { %v483_v48 = vmul.f32 %v676_v32, %v481_v47 }
 0x26a   : > { %496 = vrot.lane.b32.xlu0 %v483_v48, %s697_s24 }
 0x26b   : > { %v492_v49 = vpop.permute.xlu1 %491 }
 0x26c   : > { %494 = vst.msk [vmem:[#allocation3] sm:$0x7] %vm488_vm3, %v492_v49 }
 0x26f   : > { %v502_v50 = vpop.permute.xlu1 %501 }
 0x270   : > { %504 = vst.msk [vmem:[#allocation5] sm:$0x7] %vm488_vm3, %v502_v50 }
 0x2d8   : > { %v486_v51 = vpop.permute.xlu0 %485 }
 0x2d9   : > { %489 = vst.msk [vmem:[#allocation2] sm:$0x7] %vm488_vm3, %v486_v51  ;;  %505 = vst.msk [vmem:[%s749_s7] sm:$0x7] %vm488_vm3, %v486_v51 }
 0x2dc   : > { %v497_v52 = vpop.permute.xlu0 %496 }
 0x2dd   : > { %499 = vst.msk [vmem:[#allocation4] sm:$0x7] %vm488_vm3, %v497_v52  ;;  %506 = vst.msk [vmem:[%s754_s10] sm:$0x7] %vm488_vm3, %v497_v52 }
 0x2de PF: > { %s16_s18 = sadd.s32 1, %s687_s18  }
 0x2df   : > { %p13_p6 = scmp.ge.s32.totalorder %s16_s18, 11  }
 0x2e1   :  { %15 = sbr.rel (!%p13_p6) target bundleno = 1 (0x1), region = 85 }

// kernel: dprnn_block_forward.12
= control target key start
LH: loop header
LB: loop body
LE: loop exit
PB: predicated region body
PF: predicated region fallthrough
CT: control target
= control target key end

     0   :  { %vm90_vm0 = vcmask 1043456   ;;  %vm256_vm1 = vcmask 1040384   ;;  %vm53_vm2 = vcmask 31744   ;;  %vm788_vm3 = vmmov 1   ;;  %s1076_s4 = inlined_call_operand.vmem [shape: f32[4,9], index: 4, kind: input, shape index: {}]   ;;  %s1077_s1 = inlined_call_operand.vmem [shape: f32[96,4], index: 1, kind: input, shape index: {}]   ;;  %s1078_s3 = inlined_call_operand.vmem [shape: f32[9,9], index: 3, kind: input, shape index: {}]   ;;  %s1079_s5 = inlined_call_operand.vmem [shape: f32[4,9], index: 5, kind: input, shape index: {}]   ;;  %s1080_s0 = inlined_call_operand.vmem [shape: f32[96,9], index: 0, kind: input, shape index: {}]   ;;  %s1081_s2 = inlined_call_operand.vmem [shape: f32[96,4], index: 2, kind: input, shape index: {}]   ;;  %s1082_s6 = inlined_call_operand.vmem [shape: f32[96,9], index: 6, kind: input, shape index: {}]   ;;  %s1083_s7 = inlined_call_operand.vmem [shape: f32[96,9], index: 7, kind: output, shape index: {}]  }
   0x1   :  { %v52_v0 = vld [vmem:[%s1076_s4] sm:$0xf]  ;;  %v46_v2 = vld [vmem:[%s1077_s1 + $0x30] sm:$0xff]  ;;  %v41_v3 = vld [vmem:[%s1077_s1 + $0x8] sm:$0xff]  ;;  %vm219_vm5 = vcmask 72704  }
   0x2   :  { %v40_v1 = vld [vmem:[%s1077_s1] sm:$0xff]  ;;  %693 = vmatprep.subr.msk.mxu0 %vm90_vm0, %v52_v0  ;;  %761 = vmatprep.subr.msk.mxu1 %vm90_vm0, %v52_v0  ;;  %v47_v4 = vld [vmem:[%s1077_s1 + $0x38] sm:$0xff]  ;;  %v39_v6 = vld [vmem:[%s1078_s3 + $0x8] sm:$0x1] }
   0x3   :  { %v38_v5 = vld [vmem:[%s1078_s3] sm:$0xff]  ;;  %694 = vmatpush3.msk.msra.mxu0 %vm90_vm0, %v52_v0  ;;  %762 = vmatpush3.msk.msra.mxu1 %vm90_vm0, %v52_v0  ;;  %vm756_vm4 = vmpackc.low %vm256_vm1, %vm788_vm3  ;;  %v42_v9 = vld [vmem:[%s1077_s1 + $0x10] sm:$0xff] }
   0x4   :  { %v397_v7 = vld [vmem:[%s1079_s5] sm:$0xf]  ;;  %695 = vmatprep.mubr.msk.f32.mxu0 %vm53_vm2, %v40_v1  ;;  %704 = vmatprep.mubr.msk.f32.mxu1 %vm53_vm2, %v46_v2  ;;  %v755_v8 = vpack.c.bf16 %v39_v6, %v38_v5  ;;  %v43_v11 = vld [vmem:[%s1077_s1 + $0x18] sm:$0xff]  ;;  %v49_v12 = vld [vmem:[%s1077_s1 + $0x48] sm:$0xff] }
   0x5   :  { %696 = vmatmul.mubr.msk.f32.vlgmr.msra.gmra.mrb[0].mxu0 %vm53_vm2, %v41_v3  ;;  %705 = vmatmul.mubr.msk.f32.vlgmr.msra.gmra.mrb[0].mxu1 %vm53_vm2, %v47_v4  ;;  %v48_v10 = vld [vmem:[%s1077_s1 + $0x40] sm:$0xff]  ;;  %v50_v14 = vld [vmem:[%s1077_s1 + $0x50] sm:$0xff]  ;;  %v45_v15 = vld [vmem:[%s1077_s1 + $0x28] sm:$0xff] }
   0x6   :  { %757 = vmatprep.subr.msk.bf16.mxu1 %vm756_vm4, %v755_v8  ;;  %735 = vmatprep.subr.msk.mxu0 %vm90_vm0, %v397_v7  ;;  %v44_v13 = vld [vmem:[%s1077_s1 + $0x20] sm:$0xff]  ;;  %v51_v16 = vld [vmem:[%s1077_s1 + $0x58] sm:$0xff]  ;;  %v27_v19 = vld [vmem:[%s1080_s0 + $0x8] sm:$0xff] }
   0x7   :  { %760 = vmatpush3.bf16.msk.msra.mxu1 %vm756_vm4, %v755_v8  ;;  %736 = vmatpush3.msk.msra.mxu0 %vm90_vm0, %v397_v7  ;;  %v26_v17 = vld [vmem:[%s1080_s0] sm:$0xff]  ;;  %v386_v20 = vld [vmem:[%s1081_s2 + $0x8] sm:$0xff]  ;;  %v28_v21 = vld [vmem:[%s1080_s0 + $0x10] sm:$0xff] }
   0x8   :  { %698 = vmatprep.mubr.msk.f32.mxu0 %vm53_vm2, %v42_v9  ;;  %707 = vmatprep.mubr.msk.f32.mxu1 %vm53_vm2, %v48_v10  ;;  %v385_v18 = vld [vmem:[%s1081_s2] sm:$0xff]  ;;  %v387_v22 = vld [vmem:[%s1081_s2 + $0x10] sm:$0xff]  ;;  %v29_v23 = vld [vmem:[%s1080_s0 + $0x18] sm:$0xff] }
   0x9   :  { %699 = vmatmul.mubr.msk.f32.gmra.mrb[2].mxu0 %vm53_vm2, %v43_v11  ;;  %708 = vmatmul.mubr.msk.f32.gmra.mrb[2].mxu1 %vm53_vm2, %v49_v12  ;;  %v388_v24 = vld [vmem:[%s1081_s2 + $0x18] sm:$0xff]  ;;  %v30_v25 = vld [vmem:[%s1080_s0 + $0x20] sm:$0xff]  ;;  %v31_v27 = vld [vmem:[%s1080_s0 + $0x28] sm:$0xff] }
   0xa   :  { %701 = vmatprep.mubr.msk.f32.mxu0 %vm53_vm2, %v44_v13  ;;  %710 = vmatprep.mubr.msk.f32.mxu1 %vm53_vm2, %v50_v14  ;;  %v389_v26 = vld [vmem:[%s1081_s2 + $0x20] sm:$0xff]  ;;  %v390_v28 = vld [vmem:[%s1081_s2 + $0x28] sm:$0xff]  ;;  %v32_v29 = vld [vmem:[%s1080_s0 + $0x30] sm:$0xff] }
   0xb   :  { %v391_v30 = vld [vmem:[%s1081_s2 + $0x30] sm:$0xff]  ;;  %v33_v31 = vld [vmem:[%s1080_s0 + $0x38] sm:$0xff]  ;;  %v34_v33 = vld [vmem:[%s1080_s0 + $0x40] sm:$0xff] }
   0xc   :  { %v392_v32 = vld [vmem:[%s1081_s2 + $0x38] sm:$0xff]  ;;  %v393_v34 = vld [vmem:[%s1081_s2 + $0x40] sm:$0xff]  ;;  %v35_v35 = vld [vmem:[%s1080_s0 + $0x48] sm:$0xff] }
   0xd   :  { %702 = vmatmul.mubr.msk.f32.gmra.mrb[4].mxu0 %vm53_vm2, %v45_v15  ;;  %711 = vmatmul.mubr.msk.f32.gmra.mrb[4].mxu1 %vm53_vm2, %v51_v16  ;;  %v394_v36 = vld [vmem:[%s1081_s2 + $0x48] sm:$0xff]  ;;  %v36_v37 = vld [vmem:[%s1080_s0 + $0x50] sm:$0xff]  ;;  %v37_v39 = vld [vmem:[%s1080_s0 + $0x58] sm:$0xff] }
   0xe   :  { %717 = vmatprep.mubr.msk.f32.mxu1 %vm219_vm5, %v26_v17  ;;  %737 = vmatprep.mubr.msk.f32.mxu0 %vm53_vm2, %v385_v18  ;;  %v395_v38 = vld [vmem:[%s1081_s2 + $0x50] sm:$0xff]  ;;  %v396_v40 = vld [vmem:[%s1081_s2 + $0x58] sm:$0xff]  ;;  %v575_v52 = vld [vmem:[%s1082_s6 + $0x8] sm:$0xff] }
   0xf   :  { %v574_v55 = vld [vmem:[%s1082_s6] sm:$0xff]  ;;  %v577_v0 = vld [vmem:[%s1082_s6 + $0x18] sm:$0xff]  ;;  %v576_v3 = vld [vmem:[%s1082_s6 + $0x10] sm:$0xff] }
  0x10   :  { %v579_v12 = vld [vmem:[%s1082_s6 + $0x28] sm:$0xff]  ;;  %v578_v15 = vld [vmem:[%s1082_s6 + $0x20] sm:$0xff] }
  0x11   :  { %718 = vmatmul.mubr.msk.f32.vlgmr.msra.gmra.mrb[6].mxu1 %vm219_vm5, %v27_v19  ;;  %738 = vmatmul.mubr.msk.f32.vlgmr.msra.gmra.mrb[6].mxu0 %vm53_vm2, %v386_v20  ;;  %v581_v19 = vld [vmem:[%s1082_s6 + $0x38] sm:$0xff] }
  0x12   :  { %720 = vmatprep.mubr.msk.f32.mxu1 %vm219_vm5, %v28_v21  ;;  %740 = vmatprep.mubr.msk.f32.mxu0 %vm53_vm2, %v387_v22 }
  0x15   :  { %721 = vmatmul.mubr.msk.f32.gmra.mrb[8].mxu1 %vm219_vm5, %v29_v23  ;;  %741 = vmatmul.mubr.msk.f32.gmra.mrb[8].mxu0 %vm53_vm2, %v388_v24  ;;  %v580_v24 = vld [vmem:[%s1082_s6 + $0x30] sm:$0xff] }
  0x16   :  { %723 = vmatprep.mubr.msk.f32.mxu1 %vm219_vm5, %v30_v25  ;;  %743 = vmatprep.mubr.msk.f32.mxu0 %vm53_vm2, %v389_v26 }
  0x19   :  { %724 = vmatmul.mubr.msk.f32.gmra.mrb[10].mxu1 %vm219_vm5, %v31_v27  ;;  %744 = vmatmul.mubr.msk.f32.gmra.mrb[10].mxu0 %vm53_vm2, %v390_v28 }
  0x1a   :  { %726 = vmatprep.mubr.msk.f32.mxu1 %vm219_vm5, %v32_v29  ;;  %746 = vmatprep.mubr.msk.f32.mxu0 %vm53_vm2, %v391_v30 }
  0x1d   :  { %727 = vmatmul.mubr.msk.f32.gmra.mrb[0].mxu1 %vm219_vm5, %v33_v31  ;;  %747 = vmatmul.mubr.msk.f32.gmra.mrb[12].mxu0 %vm53_vm2, %v392_v32  ;;  %v583_v31 = vld [vmem:[%s1082_s6 + $0x48] sm:$0xff] }
  0x1e   :  { %729 = vmatprep.mubr.msk.f32.mxu1 %vm219_vm5, %v34_v33  ;;  %749 = vmatprep.mubr.msk.f32.mxu0 %vm53_vm2, %v393_v34 }
  0x21   :  { %730 = vmatmul.mubr.msk.f32.gmra.mrb[2].mxu1 %vm219_vm5, %v35_v35  ;;  %750 = vmatmul.mubr.msk.f32.gmra.mrb[14].mxu0 %vm53_vm2, %v394_v36  ;;  %v582_v35 = vld [vmem:[%s1082_s6 + $0x40] sm:$0xff] }
  0x22   :  { %732 = vmatprep.mubr.msk.f32.mxu1 %vm219_vm5, %v36_v37  ;;  %752 = vmatprep.mubr.msk.f32.mxu0 %vm53_vm2, %v395_v38 }
  0x25   :  { %733 = vmatmul.mubr.msk.f32.gmra.mrb[4].mxu1 %vm219_vm5, %v37_v39  ;;  %753 = vmatmul.mubr.msk.f32.gmra.mrb[16].mxu0 %vm53_vm2, %v396_v40 }
  0xd8   :  { %v697_v41 = vpop.f32.mrb[0].mxu0 }
  0xd9   :  { %v160_v42 = vpop.f32.mrb[1].mxu0 }
  0xdc   :  { %v700_v43 = vpop.f32.mrb[2].mxu0 }
  0xdd   :  { %v170_v44 = vpop.f32.mrb[3].mxu0 }
  0xe0   :  { %v703_v45 = vpop.f32.mrb[4].mxu0 }
  0xe1   :  { %v180_v46 = vpop.f32.mrb[5].mxu0 }
  0xe4   :  { %v719_v47 = vpop.f32.mrb[6].mxu1  ;;  %v739_v48 = vpop.f32.mrb[6].mxu0 }
  0xe5   :  { %v332_v49 = vadd.f32 %v719_v47, %v697_v41  ;;  %v326_v50 = vpop.f32.mrb[7].mxu1  ;;  %v503_v51 = vpop.f32.mrb[7].mxu0  ;;  %v585_v41 = vld [vmem:[%s1082_s6 + $0x58] sm:$0xff] }
  0xe6   :  { %v327_v53 = vadd.f32 %v326_v50, %v160_v42 }
  0xe7   :  { %v563_v54 = vadd.f32 %v739_v48, %v332_v49 }
  0xe8   :  { %v562_v56 = vadd.f32 %v503_v51, %v327_v53  ;;  %v722_v57 = vpop.f32.mrb[8].mxu1  ;;  %v742_v58 = vpop.f32.mrb[8].mxu0 }
  0xe9   :  { %v587_v59 = vadd.f32 %v575_v52, %v563_v54  ;;  %v342_v60 = vadd.f32 %v722_v57, %v700_v43  ;;  %v336_v61 = vpop.f32.mrb[9].mxu1  ;;  %v513_v62 = vpop.f32.mrb[9].mxu0 }
  0xea   :  { %v586_v63 = vadd.f32 %v574_v55, %v562_v56  ;;  %v337_v1 = vadd.f32 %v336_v61, %v170_v44 }
  0xeb   :  { %599 = vst.msk [vmem:[%s1083_s7 + $0x8] sm:$0xff] %vm219_vm5, %v587_v59  ;;  %v565_v2 = vadd.f32 %v742_v58, %v342_v60 }
  0xec   :  { %598 = vst.msk [vmem:[%s1083_s7] sm:$0xff] %vm219_vm5, %v586_v63  ;;  %v564_v4 = vadd.f32 %v513_v62, %v337_v1  ;;  %v725_v5 = vpop.f32.mrb[10].mxu1  ;;  %v745_v6 = vpop.f32.mrb[10].mxu0 }
  0xed   :  { %v589_v7 = vadd.f32 %v577_v0, %v565_v2  ;;  %v352_v8 = vadd.f32 %v725_v5, %v703_v45  ;;  %v346_v9 = vpop.f32.mrb[11].mxu1  ;;  %v523_v10 = vpop.f32.mrb[11].mxu0  ;;  %v584_v45 = vld [vmem:[%s1082_s6 + $0x50] sm:$0xff] }
  0xee   :  { %v588_v11 = vadd.f32 %v576_v3, %v564_v4  ;;  %v347_v13 = vadd.f32 %v346_v9, %v180_v46 }
  0xef   :  { %601 = vst.msk [vmem:[%s1083_s7 + $0x18] sm:$0xff] %vm219_vm5, %v589_v7  ;;  %v567_v14 = vadd.f32 %v745_v6, %v352_v8 }
  0xf0   :  { %600 = vst.msk [vmem:[%s1083_s7 + $0x10] sm:$0xff] %vm219_vm5, %v588_v11  ;;  %v566_v16 = vadd.f32 %v523_v10, %v347_v13  ;;  %v728_v17 = vpop.f32.mrb[0].mxu1  ;;  %v748_v18 = vpop.f32.mrb[12].mxu0 }
  0xf1   :  { %v591_v20 = vadd.f32 %v579_v12, %v567_v14  ;;  %v775_v21 = vadd.f32 %v748_v18, %v728_v17  ;;  %v356_v22 = vpop.f32.mrb[1].mxu1  ;;  %v533_v23 = vpop.f32.mrb[13].mxu0 }
  0xf2   :  { %v590_v25 = vadd.f32 %v578_v15, %v566_v16  ;;  %v776_v26 = vadd.f32 %v533_v23, %v356_v22 }
  0xf3   :  { %603 = vst.msk [vmem:[%s1083_s7 + $0x28] sm:$0xff] %vm219_vm5, %v591_v20  ;;  %v593_v27 = vadd.f32 %v775_v21, %v581_v19 }
  0xf4   :  { %602 = vst.msk [vmem:[%s1083_s7 + $0x20] sm:$0xff] %vm219_vm5, %v590_v25  ;;  %v592_v28 = vadd.f32 %v776_v26, %v580_v24  ;;  %v731_v29 = vpop.f32.mrb[2].mxu1  ;;  %v751_v30 = vpop.f32.mrb[14].mxu0 }
  0xf5   :  { %605 = vst.msk [vmem:[%s1083_s7 + $0x38] sm:$0xff] %vm219_vm5, %v593_v27  ;;  %v777_v32 = vadd.f32 %v751_v30, %v731_v29  ;;  %v366_v33 = vpop.f32.mrb[3].mxu1  ;;  %v543_v34 = vpop.f32.mrb[15].mxu0 }
  0xf6   :  { %604 = vst.msk [vmem:[%s1083_s7 + $0x30] sm:$0xff] %vm219_vm5, %v592_v28  ;;  %v778_v36 = vadd.f32 %v543_v34, %v366_v33 }
  0xf7   :  { %v595_v37 = vadd.f32 %v777_v32, %v583_v31 }
  0xf8   :  { %v594_v38 = vadd.f32 %v778_v36, %v582_v35  ;;  %v734_v39 = vpop.f32.mrb[4].mxu1  ;;  %v754_v40 = vpop.f32.mrb[16].mxu0 }
  0xf9   :  { %607 = vst.msk [vmem:[%s1083_s7 + $0x48] sm:$0xff] %vm219_vm5, %v595_v37  ;;  %v779_v42 = vadd.f32 %v754_v40, %v734_v39  ;;  %v376_v43 = vpop.f32.mrb[5].mxu1  ;;  %v553_v44 = vpop.f32.mrb[17].mxu0 }
  0xfa   :  { %606 = vst.msk [vmem:[%s1083_s7 + $0x40] sm:$0xff] %vm219_vm5, %v594_v38  ;;  %v780_v46 = vadd.f32 %v553_v44, %v376_v43 }
  0xfb   :  { %v597_v47 = vadd.f32 %v779_v42, %v585_v41 }
  0xfc   :  { %v596_v48 = vadd.f32 %v780_v46, %v584_v45 }
  0xfd   :  { %609 = vst.msk [vmem:[%s1083_s7 + $0x58] sm:$0xff] %vm219_vm5, %v597_v47 }
  0xfe   :  { %608 = vst.msk [vmem:[%s1083_s7 + $0x50] sm:$0xff] %vm219_vm5, %v596_v48 }

// kernel: dprnn_block_forward.11
= control target key start
LH: loop header
LB: loop body
LE: loop exit
PB: predicated region body
PF: predicated region fallthrough
CT: control target
= control target key end

     0   :  { %s721_s18 = smov 0   ;;  %s768_s0 = inlined_call_operand.vmem [shape: f32[32,3,16], index: 0, kind: input, shape index: {}]   ;;  %s769_s1 = inlined_call_operand.vmem [shape: f32[32,3,16], index: 1, kind: input, shape index: {}]   ;;  %s770_s2 = inlined_call_operand.vmem [shape: f32[4,16], index: 2, kind: input, shape index: {}]   ;;  %s771_s3 = inlined_call_operand.vmem [shape: f32[4,16], index: 3, kind: input, shape index: {}]   ;;  %s772_s4 = inlined_call_operand.vmem [shape: f32[32,3,4], index: 4, kind: output, shape index: {0}]   ;;  %s773_s5 = inlined_call_operand.vmem [shape: f32[32,3,4], index: 5, kind: output, shape index: {1}]  }
   0x1 LB: > { %s611_s19 = sadd.s32 4294967295, %s681_s18   ;;  %p615_p0 = scmp.ge.s32.totalorder %s681_s18, 1  ;;  %s681_s18 = sphi %s721_s18, %s16_s18  }
   0x2   : > { %p204_p1 = scmp.lt.s32.totalorder %s681_s18, 33 }
   0x4   : > { %p205_p2 = pnand %p615_p0, %p204_p1 }
   0x5   : > { %p240_p3 = scmp.lt.s32.totalorder (!%p205_p2), %s611_s19, 31  ;;  %s244_s20 = ssub.s32 (!%p205_p2), 31, %s611_s19 }
   0x6   : > { %208 = sbr.rel (%p205_p2) target bundleno = 731 (0x2db), region = 36  ;;  %p245_p4 = scmp.lt.s32.totalorder (!%p205_p2), %s244_s20, 31 }
   0x7   : > { %p620_p5 = scmp.ne.s32.totalorder (!%p205_p2), %s611_s19, 0 }
   0xd   : > { %s241_s21 = scalar_select %p240_p3, %s611_s19, 31 }
   0xe   : > { %s775_s20 = smov (!%p245_p4, %s244_s20), 31  ;;  %263 = sbr.rel (%p620_p5) target bundleno = 21 (0x15), region = 40 }
   0xf   : > { %s616_s22 = sshll.u32 %s241_s21, 2  ;;  %s617_s26 = sshll.u32 %s775_s20, 2  ;;  %vm264_vm0 = vcmask (!%p620_p5), 26624   ;;  %v683_v0 = vmov (!%p620_p5), 0.0  }
  0x10   : > { %s732_s25 = scalar_lea.vmem %s768_s0, %s616_s22  ;;  %s737_s29 = scalar_lea.vmem %s769_s1, %s617_s26  ;;  %265 = vst.msk [vmem:[#allocation2] sm:$0x7] (!%p620_p5), %vm264_vm0, %v683_v0  ;;  %266 = vst.msk [vmem:[#allocation3] sm:$0x7] (!%p620_p5), %vm264_vm0, %v683_v0 }
  0x11   : > { %s742_s7 = scalar_lea.vmem %s772_s4, %s616_s22  ;;  %s747_s10 = scalar_lea.vmem %s773_s5, %s617_s26  ;;  %267 = vst.msk [vmem:[#allocation4] sm:$0x7] (!%p620_p5), %vm264_vm0, %v683_v0  ;;  %268 = vst.msk [vmem:[#allocation5] sm:$0x7] (!%p620_p5), %vm264_vm0, %v683_v0 }
  0x15 PF: > { %v271_v1 = vld [vmem:[%s770_s2] sm:$0xf]  ;;  %vm276_vm1 = vcmask 1043456   ;;  %vm272_vm2 = vcmask 31744   ;;  %v684_v2 = vmov 0.0   ;;  %vm685_vm3 = vmmov 0  }
  0x16   : > { %633 = vmatprep.subr.mxu0 %v684_v2  ;;  %635 = vmatprep.mubr.msk.f32.mxu0 %vm685_vm3, %v684_v2  ;;  %v382_v4 = vld [vmem:[%s771_s3] sm:$0xf]  ;;  %s686_s15 = smov 4   ;;  %s687_s16 = smov 120   ;;  %vm493_vm4 = vcmask 26624  }
  0x17   : > { %v270_v3 = vld [vmem:[#allocation2] sm:$0x7]  ;;  %634 = vmatpush3.msk.msra.mxu0 %vm276_vm1, %v271_v1  ;;  %638 = vmatprep.subr.mxu1 %v684_v2  ;;  %v351_v6 = vld [vmem:[#allocation3] sm:$0x7]  ;;  %s688_s17 = smov 8   ;;  %s689_s19 = smov 124  }
  0x18   : > { %v381_v5 = vld [vmem:[#allocation4] sm:$0x7]  ;;  %636 = vmatmul.mubr.msk.f32.vlgmr.msra.gmra.mrb[0].mxu0 %vm272_vm2, %v270_v3  ;;  %639 = vmatpush3.msk.msra.mxu1 %vm276_vm1, %v382_v4  ;;  %v460_v7 = vld [vmem:[#allocation5] sm:$0x7]  ;;  %v269_v8 = vld [vmem:[%s732_s25] sm:$0x7] }
  0x19   : > { %640 = vmatprep.mubr.msk.f32.mxu1 %vm685_vm3, %v684_v2  ;;  %360 = vrot.lane.b32.xlu1 %v351_v6, %s686_s15  ;;  %v380_v10 = vld [vmem:[%s737_s29] sm:$0x7]  ;;  %s690_s20 = smov 116  }
  0x1a   : > { %641 = vmatmul.mubr.msk.f32.vlgmr.msra.gmra.mrb[0].mxu1 %vm272_vm2, %v381_v5 }
  0x1d   : > { %469 = vrot.lane.b32.xlu1 %v460_v7, %s686_s15 }
  0x8b   : > { %v361_v30 = vpop.permute.xlu1 %360 }
  0x8f   : > { %v470_v32 = vpop.permute.xlu1 %469 }
  0xeb   : > { %v346_v9 = vpop.f32.mrb[0].mxu0 }
  0xec   : > { %v350_v11 = vadd.f32 %v346_v9, %v269_v8  ;;  %v637_v12 = vpop.f32.mrb[1].mxu0 }
  0xed   : > { %v455_v13 = vpop.f32.mrb[0].mxu1 }
  0xee   : > { %659 = vtanh.f32 %v350_v11  ;;  %v459_v14 = vadd.f32 %v455_v13, %v380_v10  ;;  %v642_v15 = vpop.f32.mrb[1].mxu1  ;;  %v623_v18 = vmul.f32 -1.442695, %v350_v11 }
  0xf0   : > { %661 = vtanh.f32 %v459_v14  ;;  %v626_v19 = vmul.f32 -1.442695, %v459_v14 }
  0xf1   : > { %663 = vpow2.f32 %v623_v18 }
  0xf2   : > { %665 = vpow2.f32 %v626_v19 }
  0xf8   : > { %v660_v16 = vpop.eup %659 }
  0xf9   : > { %365 = vrot.lane.b32.xlu0 %v660_v16, %s687_s16 }
  0xfa   : > { %v662_v17 = vpop.eup %661 }
  0xfb   : > { %v664_v20 = vpop.eup %663 }
  0xfc   : > { %v355_v21 = vadd.f32 1.0, %v664_v20  ;;  %v666_v22 = vpop.eup %665 }
  0xfd   : > { %474 = vrot.lane.b32.xlu0 %v662_v17, %s687_s16  ;;  %v464_v23 = vadd.f32 1.0, %v666_v22 }
  0xfe   : > { %667 = vrcp.f32 %v355_v21 }
  0xff   : > { %669 = vrcp.f32 %v464_v23 }
 0x108   : > { %v668_v24 = vpop.eup %667 }
 0x109   : > { %v670_v27 = vpop.eup %669  ;;  %v363_v31 = vmul.f32 %v668_v24, %v361_v30 }
 0x10a   : > { %v472_v35 = vmul.f32 %v670_v27, %v470_v32 }
 0x16b   : > { %v366_v25 = vpop.permute.xlu0 %365 }
 0x16c   : > { %v368_v26 = vmul.f32 %v668_v24, %v366_v25 }
 0x16e   : > { %370 = vrot.lane.b32.xlu0 %v368_v26, %s686_s15 }
 0x16f   : > { %v475_v28 = vpop.permute.xlu0 %474 }
 0x170   : > { %v477_v29 = vmul.f32 %v670_v27, %v475_v28 }
 0x172   : > { %479 = vrot.lane.b32.xlu1 %v477_v29, %s686_s15 }
 0x1e0   : > { %v371_v33 = vpop.permute.xlu0 %370 }
 0x1e1   : > { %v373_v34 = vadd.f32 %v371_v33, %v363_v31 }
 0x1e3   : > { %671 = vtanh.f32 %v373_v34 }
 0x1e4   : > { %v480_v36 = vpop.permute.xlu1 %479 }
 0x1e5   : > { %v482_v37 = vadd.f32 %v480_v36, %v472_v35 }
 0x1e7   : > { %673 = vtanh.f32 %v482_v37 }
 0x1ed   : > { %v672_v38 = vpop.eup %671 }
 0x1ee   : > { %376 = vrot.lane.b32.xlu0 %v672_v38, %s688_s17 }
 0x1f1   : > { %v674_v39 = vpop.eup %673 }
 0x1f2   : > { %485 = vrot.lane.b32.xlu1 %v674_v39, %s688_s17 }
 0x1f6   : > { %496 = vrot.lane.b32.xlu1 %v373_v34, %s689_s19 }
 0x1fa   : > { %506 = vrot.lane.b32.xlu1 %v482_v37, %s689_s19 }
 0x260   : > { %v377_v40 = vpop.permute.xlu0 %376 }
 0x261   : > { %v379_v41 = vmul.f32 %v668_v24, %v377_v40 }
 0x263   : > { %490 = vrot.lane.b32.xlu0 %v379_v41, %s690_s20 }
 0x264   : > { %v486_v42 = vpop.permute.xlu1 %485 }
 0x265   : > { %v488_v43 = vmul.f32 %v670_v27, %v486_v42 }
 0x267   : > { %501 = vrot.lane.b32.xlu0 %v488_v43, %s690_s20 }
 0x268   : > { %v497_v44 = vpop.permute.xlu1 %496 }
 0x269   : > { %499 = vst.msk [vmem:[#allocation3] sm:$0x7] %vm493_vm4, %v497_v44 }
 0x26c   : > { %v507_v45 = vpop.permute.xlu1 %506 }
 0x26d   : > { %509 = vst.msk [vmem:[#allocation5] sm:$0x7] %vm493_vm4, %v507_v45 }
 0x2d5   : > { %v491_v46 = vpop.permute.xlu0 %490 }
 0x2d6   : > { %494 = vst.msk [vmem:[#allocation2] sm:$0x7] %vm493_vm4, %v491_v46  ;;  %510 = vst.msk [vmem:[%s742_s7] sm:$0x7] %vm493_vm4, %v491_v46 }
 0x2d9   : > { %v502_v47 = vpop.permute.xlu0 %501 }
 0x2da   : > { %504 = vst.msk [vmem:[#allocation4] sm:$0x7] %vm493_vm4, %v502_v47  ;;  %511 = vst.msk [vmem:[%s747_s10] sm:$0x7] %vm493_vm4, %v502_v47 }
 0x2db PF: > { %s16_s18 = sadd.s32 1, %s681_s18  }
 0x2dc   : > { %p13_p6 = scmp.ge.s32.totalorder %s16_s18, 34  }
 0x2de   :  { %15 = sbr.rel (!%p13_p6) target bundleno = 1 (0x1), region = 85 }

</bundles_post_ra>
